<compile_context>
chip_gen: v6e
topology: v6e:2x2x1
jax: 0.10.0
libtpu: 0.0.40
codegen_flags: <defaults>
</compile_context>

<pallas_src>
import jax
import jax.numpy as jnp
from jax import lax
from jax.experimental import pallas as pl
from jax.experimental.pallas import tpu as pltpu

FP_DIM = 2048
LATENT_DIM = 128


def value_mlp_kernel(x_ref, w1_ref, b1_ref, w2_ref, b2_ref, w3_ref, b3_ref, o_ref):
    # x streamed at its native dtype (typically f32); cast per-tile to the
    # MXU compute dtype (weights' dtype) -- a VPU cast, no extra HBM pass.
    x = x_ref[...].astype(w1_ref.dtype)

    # Layer 1: Linear(fp -> lat) + ReLU   (Dropout == identity at inference)
    h = jnp.dot(x, w1_ref[...], preferred_element_type=jnp.float32) + b1_ref[...]
    h = jnp.maximum(h, 0.0).astype(w2_ref.dtype)

    # Layer 2: Linear(lat -> lat) + ReLU  (Dropout == identity at inference)
    h = jnp.dot(h, w2_ref[...], preferred_element_type=jnp.float32) + b2_ref[...]
    h = jnp.maximum(h, 0.0).astype(w3_ref.dtype)

    # Output layer: Linear(lat -> 1), computed transposed so the result is a
    # lane-dense (1, tb) row:  y[0, j] = sum_k w3[0, k] * h[j, k]
    y = lax.dot_general(
        w3_ref[...], h,
        dimension_numbers=(((1,), (1,)), ((), ())),
        preferred_element_type=jnp.float32,
    )  # (1, tb)
    y = y + b3_ref[...]  # (1,1) broadcasts

    # Numerically stable softplus == log(1 + exp(y))
    sp = jnp.maximum(y, 0.0) + jnp.log1p(jnp.exp(-jnp.abs(y)))
    o_ref[...] = sp.reshape(o_ref.shape)

    # TODO(synk): training-mode Dropout (stochastic masking with pltpu.prng_*)
    # is omitted; eval-mode Dropout is the identity, which is what is modeled.


def _round_up(v, m):
    return ((v + m - 1) // m) * m


def _choose_tb(B, tb_max=1024):
    """Batch tile: multiple of 8, <= tb_max, and an even tile count (>=2 when
    B allows) so both v7x TensorCores get balanced work."""
    if B <= 8:
        return 8
    n_tiles = max(2, pl.cdiv(B, tb_max))
    if n_tiles % 2:
        n_tiles += 1
    return max(8, _round_up(pl.cdiv(B, n_tiles), 8))


def _vmem_limit_bytes(tb, fp, lat, x_itemsize, w_itemsize):
    x_buf = 2 * tb * fp * x_itemsize                      # double-buffered x tile
    w_buf = 2 * (fp * lat + lat * lat + lat) * w_itemsize  # bf16 params (x2 bufs)
    b_buf = 2 * (lat + lat + 1) * 4                        # f32 biases
    o_buf = 2 * tb * 4                                     # (1, tb) f32 out block
    need = x_buf + w_buf + b_buf + o_buf
    # +4 MiB slack for compiler temporaries; stay well under v7x's 64 MiB VMEM.
    return int(min(max(need + (4 << 20), 16 << 20), 56 << 20))


def value_mlp(x, w1, b1, w2, b2, w3, b3, *, tb=None,
              compute_dtype=jnp.bfloat16):
    B, fp = x.shape
    lat = w1.shape[1]

    if tb is None:
        tb = _choose_tb(B)
    else:
        tb = max(8, _round_up(int(tb), 8))
    n_tiles = pl.cdiv(B, tb)   # no padding: Pallas handles the partial tail block

    # Weights are tiny -> one-time bf16 cast in the wrapper is fine; x stays
    # in its native dtype and is cast per-tile inside the kernel.
    w1c = w1.astype(compute_dtype)
    w2c = w2.astype(compute_dtype)
    w3_row = w3.reshape(1, lat).astype(compute_dtype)
    b1f = b1.reshape(1, lat).astype(jnp.float32)
    b2f = b2.reshape(1, lat).astype(jnp.float32)
    b3f = b3.reshape(1, 1).astype(jnp.float32)

    const2 = lambda i: (0, 0)
    vmem_limit = _vmem_limit_bytes(tb, fp, lat, x.dtype.itemsize,
                                   jnp.dtype(compute_dtype).itemsize)

    out_rows = pl.pallas_call(
        value_mlp_kernel,
        out_shape=jax.ShapeDtypeStruct((n_tiles, 1, tb), jnp.float32),
        grid_spec=pltpu.PrefetchScalarGridSpec(
            num_scalar_prefetch=0,
            grid=(n_tiles,),
            in_specs=[
                pl.BlockSpec((tb, fp), lambda i: (i, 0)),   # x tile (native dtype)
                pl.BlockSpec((fp, lat), const2),            # w1
                pl.BlockSpec((1, lat), const2),             # b1
                pl.BlockSpec((lat, lat), const2),           # w2
                pl.BlockSpec((1, lat), const2),             # b2
                pl.BlockSpec((1, lat), const2),             # w3 (as row)
                pl.BlockSpec((1, 1), const2),               # b3
            ],
            # Lane-dense output: one (1, tb) row per grid step.
            out_specs=pl.BlockSpec((1, 1, tb), lambda i: (i, 0, 0)),
        ),
        compiler_params=pltpu.CompilerParams(
            dimension_semantics=("parallel",),
            vmem_limit_bytes=vmem_limit,
        ),
    )(x, w1c, b1f, w2c, b2f, w3_row, b3f)

    # (n_tiles, 1, tb) row-major == batch order; drop tail garbage, restore (B, 1).
    return out_rows.reshape(n_tiles * tb, 1)[:B]


def init_params(key):
    """nn.Linear-style init (uniform +-1/sqrt(fan_in)); weights stored as
    (in_features, out_features)."""
    ks = jax.random.split(key, 6)

    def lin(kw, kb, fan_in, fan_out):
        bound = 1.0 / jnp.sqrt(fan_in)
        w = jax.random.uniform(kw, (fan_in, fan_out), jnp.float32, -bound, bound)
        b = jax.random.uniform(kb, (1, fan_out), jnp.float32, -bound, bound)
        return w, b

    w1, b1 = lin(ks[0], ks[1], FP_DIM, LATENT_DIM)
    w2, b2 = lin(ks[2], ks[3], LATENT_DIM, LATENT_DIM)
    w3, b3 = lin(ks[4], ks[5], LATENT_DIM, 1)
    return w1, b1, w2, b2, w3, b3


if __name__ == "__main__":
    key = jax.random.PRNGKey(0)
    k_x, k_p = jax.random.split(key)

    batch = 200  # not tile-aligned -> exercises the un-padded partial tail block
    x = jax.random.normal(k_x, (batch, FP_DIM), dtype=jnp.float32)
    w1, b1, w2, b2, w3, b3 = init_params(k_p)

    out = value_mlp(x, w1, b1, w2, b2, w3, b3)
    out = jax.block_until_ready(out)
    assert out.shape == (batch, 1)

    # Pure-JAX reference following the same bf16-stream / f32-accumulate path.
    cd = jnp.bfloat16
    h = jnp.dot(x.astype(cd), w1.astype(cd), preferred_element_type=jnp.float32) + b1
    h = jnp.maximum(h, 0.0).astype(cd)
    h = jnp.dot(h, w2.astype(cd), preferred_element_type=jnp.float32) + b2
    h = jnp.maximum(h, 0.0).astype(cd)
    y = jnp.dot(h, w3.astype(cd), preferred_element_type=jnp.float32) + b3
    ref = jnp.maximum(y, 0.0) + jnp.log1p(jnp.exp(-jnp.abs(y)))

    assert jnp.allclose(out, ref, atol=1e-3, rtol=1e-3), (
        float(jnp.max(jnp.abs(out - ref))))

    print("KERNEL_OK")
</pallas_src>

<mosaic_0001>
module attributes {stable_mosaic.version = 11 : i64} {
  func.func @value_mlp_kernel(%arg0: i32, %arg1: memref<104x2048xf32, #tpu.memory_space<vmem>>, %arg2: memref<2048x128xbf16, #tpu.memory_space<vmem>>, %arg3: memref<1x128xf32, #tpu.memory_space<vmem>>, %arg4: memref<128x128xbf16, #tpu.memory_space<vmem>>, %arg5: memref<1x128xf32, #tpu.memory_space<vmem>>, %arg6: memref<1x128xbf16, #tpu.memory_space<vmem>>, %arg7: memref<1x1xf32, #tpu.memory_space<vmem>>, %arg8: memref<1x1x104xf32, #tpu.memory_space<vmem>>) attributes {dimension_semantics = [#tpu.dimension_semantics<parallel>], iteration_bounds = array<i64: 2>, scalar_prefetch = 0 : i64, scratch_operands = 0 : i64, tpu.core_type = #tpu.core_type<tc>, window_params = [{transform_indices = @transform_0, window_bounds = array<i64: 104, 2048>}, {pipeline_mode = #tpu.pipeline_mode<synchronous>, transform_indices = @transform_1, window_bounds = array<i64: 2048, 128>}, {pipeline_mode = #tpu.pipeline_mode<synchronous>, transform_indices = @transform_2, window_bounds = array<i64: 1, 128>}, {pipeline_mode = #tpu.pipeline_mode<synchronous>, transform_indices = @transform_3, window_bounds = array<i64: 128, 128>}, {pipeline_mode = #tpu.pipeline_mode<synchronous>, transform_indices = @transform_4, window_bounds = array<i64: 1, 128>}, {pipeline_mode = #tpu.pipeline_mode<synchronous>, transform_indices = @transform_5, window_bounds = array<i64: 1, 128>}, {pipeline_mode = #tpu.pipeline_mode<synchronous>, transform_indices = @transform_6, window_bounds = array<i64: 1, 1>}, {transform_indices = @transform_7, window_bounds = array<i64: 1, 1, 104>}]} {
    %c0 = arith.constant 0 : index
    %c0_0 = arith.constant 0 : index
    %0 = vector.load %arg1[%c0, %c0_0] : memref<104x2048xf32, #tpu.memory_space<vmem>>, vector<104x2048xf32>
    %1 = arith.truncf %0 : vector<104x2048xf32> to vector<104x2048xbf16>
    %c0_1 = arith.constant 0 : index
    %c0_2 = arith.constant 0 : index
    %2 = vector.load %arg2[%c0_1, %c0_2] : memref<2048x128xbf16, #tpu.memory_space<vmem>>, vector<2048x128xbf16>
    %cst = arith.constant dense<0.000000e+00> : vector<104x128xf32>
    %3 = tpu.matmul %1, %2, %cst {dimension_numbers = #tpu.dot_dimension_numbers<[1], [0], [0], [1], [0, 0, 1, 1], [], []>} : vector<104x2048xbf16>, vector<2048x128xbf16>, vector<104x128xf32> -> vector<104x128xf32>
    %c0_3 = arith.constant 0 : index
    %c0_4 = arith.constant 0 : index
    %4 = vector.load %arg3[%c0_3, %c0_4] : memref<1x128xf32, #tpu.memory_space<vmem>>, vector<1x128xf32>
    %5 = vector.broadcast %4 : vector<1x128xf32> to vector<104x128xf32>
    %6 = arith.addf %3, %5 : vector<104x128xf32>
    %cst_5 = arith.constant 0.000000e+00 : f32
    %7 = vector.broadcast %cst_5 : f32 to vector<104x128xf32>
    %8 = arith.maximumf %6, %7 : vector<104x128xf32>
    %9 = arith.truncf %8 : vector<104x128xf32> to vector<104x128xbf16>
    %c0_6 = arith.constant 0 : index
    %c0_7 = arith.constant 0 : index
    %10 = vector.load %arg4[%c0_6, %c0_7] : memref<128x128xbf16, #tpu.memory_space<vmem>>, vector<128x128xbf16>
    %cst_8 = arith.constant dense<0.000000e+00> : vector<104x128xf32>
    %11 = tpu.matmul %9, %10, %cst_8 {dimension_numbers = #tpu.dot_dimension_numbers<[1], [0], [0], [1], [0, 0, 1, 1], [], []>} : vector<104x128xbf16>, vector<128x128xbf16>, vector<104x128xf32> -> vector<104x128xf32>
    %c0_9 = arith.constant 0 : index
    %c0_10 = arith.constant 0 : index
    %12 = vector.load %arg5[%c0_9, %c0_10] : memref<1x128xf32, #tpu.memory_space<vmem>>, vector<1x128xf32>
    %13 = vector.broadcast %12 : vector<1x128xf32> to vector<104x128xf32>
    %14 = arith.addf %11, %13 : vector<104x128xf32>
    %cst_11 = arith.constant 0.000000e+00 : f32
    %15 = vector.broadcast %cst_11 : f32 to vector<104x128xf32>
    %16 = arith.maximumf %14, %15 : vector<104x128xf32>
    %17 = arith.truncf %16 : vector<104x128xf32> to vector<104x128xbf16>
    %c0_12 = arith.constant 0 : index
    %c0_13 = arith.constant 0 : index
    %18 = vector.load %arg6[%c0_12, %c0_13] : memref<1x128xbf16, #tpu.memory_space<vmem>>, vector<1x128xbf16>
    %cst_14 = arith.constant dense<0.000000e+00> : vector<1x104xf32>
    %19 = tpu.matmul %18, %17, %cst_14 {dimension_numbers = #tpu.dot_dimension_numbers<[1], [1], [0], [0], [0, 0, 1, 0], [], []>} : vector<1x128xbf16>, vector<104x128xbf16>, vector<1x104xf32> -> vector<1x104xf32>
    %c0_15 = arith.constant 0 : index
    %c0_16 = arith.constant 0 : index
    %20 = vector.load %arg7[%c0_15, %c0_16] : memref<1x1xf32, #tpu.memory_space<vmem>>, vector<1x1xf32>
    %21 = vector.broadcast %20 : vector<1x1xf32> to vector<1x104xf32>
    %22 = arith.addf %19, %21 : vector<1x104xf32>
    %cst_17 = arith.constant 0.000000e+00 : f32
    %23 = vector.broadcast %cst_17 : f32 to vector<1x104xf32>
    %24 = arith.maximumf %22, %23 : vector<1x104xf32>
    %25 = math.absf %22 : vector<1x104xf32>
    %cst_18 = arith.constant 0.000000e+00 : f32
    %26 = vector.broadcast %cst_18 : f32 to vector<1x104xf32>
    %27 = arith.subf %26, %25 : vector<1x104xf32>
    %28 = math.exp %27 : vector<1x104xf32>
    %29 = math.log1p %28 : vector<1x104xf32>
    %30 = arith.addf %24, %29 : vector<1x104xf32>
    %31 = vector.shape_cast %30 : vector<1x104xf32> to vector<1x1x104xf32>
    %c0_19 = arith.constant 0 : index
    %c0_20 = arith.constant 0 : index
    %c0_21 = arith.constant 0 : index
    %32 = vector.load %arg8[%c0_19, %c0_20, %c0_21] : memref<1x1x104xf32, #tpu.memory_space<vmem>>, vector<1x1x104xf32>
    tpu.vector_store %arg8[%c0_19, %c0_20, %c0_21], %31 {strides = array<i32>} : memref<1x1x104xf32, #tpu.memory_space<vmem>>, vector<1x1x104xf32>,
    return
  }
  func.func @transform_0(%arg0: i32) -> (i32, i32) {
    %c0_i32 = arith.constant 0 : i32
    %c0_i32_0 = arith.constant 0 : i32
    return %arg0, %c0_i32 : i32, i32
  }
  func.func @transform_1(%arg0: i32) -> (i32, i32) {
    %c0_i32 = arith.constant 0 : i32
    %c0_i32_0 = arith.constant 0 : i32
    %c0_i32_1 = arith.constant 0 : i32
    return %c0_i32, %c0_i32_0 : i32, i32
  }
  func.func @transform_2(%arg0: i32) -> (i32, i32) {
    %c0_i32 = arith.constant 0 : i32
    %c0_i32_0 = arith.constant 0 : i32
    %c0_i32_1 = arith.constant 0 : i32
    return %c0_i32, %c0_i32_0 : i32, i32
  }
  func.func @transform_3(%arg0: i32) -> (i32, i32) {
    %c0_i32 = arith.constant 0 : i32
    %c0_i32_0 = arith.constant 0 : i32
    %c0_i32_1 = arith.constant 0 : i32
    return %c0_i32, %c0_i32_0 : i32, i32
  }
  func.func @transform_4(%arg0: i32) -> (i32, i32) {
    %c0_i32 = arith.constant 0 : i32
    %c0_i32_0 = arith.constant 0 : i32
    %c0_i32_1 = arith.constant 0 : i32
    return %c0_i32, %c0_i32_0 : i32, i32
  }
  func.func @transform_5(%arg0: i32) -> (i32, i32) {
    %c0_i32 = arith.constant 0 : i32
    %c0_i32_0 = arith.constant 0 : i32
    %c0_i32_1 = arith.constant 0 : i32
    return %c0_i32, %c0_i32_0 : i32, i32
  }
  func.func @transform_6(%arg0: i32) -> (i32, i32) {
    %c0_i32 = arith.constant 0 : i32
    %c0_i32_0 = arith.constant 0 : i32
    %c0_i32_1 = arith.constant 0 : i32
    return %c0_i32, %c0_i32_0 : i32, i32
  }
  func.func @transform_7(%arg0: i32) -> (i32, i32, i32) {
    %c0_i32 = arith.constant 0 : i32
    %c0_i32_0 = arith.constant 0 : i32
    %c0_i32_1 = arith.constant 0 : i32
    return %arg0, %c0_i32, %c0_i32_0 : i32, i32, i32
  }
}

</mosaic_0001>

<bundles_post_ra>
// kernel: tpu_custom_call.1
= control target key start
LH: loop header
LB: loop body
LE: loop exit
PB: predicated region body
PF: predicated region fallthrough
CT: control target
= control target key end

     0   :  { %s4821_s0 = inlined_call_operand.hbm [shape: f32[200,2048], index: 0, kind: input, shape index: {}]   ;;  %s4822_s1 = inlined_call_operand.hbm [shape: bf16[2048,128], index: 1, kind: input, shape index: {}]   ;;  %s4823_s2 = inlined_call_operand.hbm [shape: f32[1,128], index: 2, kind: input, shape index: {}]   ;;  %s4824_s3 = inlined_call_operand.hbm [shape: bf16[128,128], index: 3, kind: input, shape index: {}]   ;;  %s4825_s4 = inlined_call_operand.hbm [shape: f32[1,128], index: 4, kind: input, shape index: {}]   ;;  %s4826_s5 = inlined_call_operand.hbm [shape: bf16[1,128], index: 5, kind: input, shape index: {}]   ;;  %s4827_s6 = inlined_call_operand.<no memory space> [shape: f32[1,1], index: 6, kind: input, shape index: {}]   ;;  %s4828_s7 = inlined_call_operand.hbm [shape: f32[2,1,104], index: 7, kind: output, shape index: {}]  }
   0x1   :  { %4835 = sst [smem:[#allocation39_spill]] %s4822_s1  ;;  %v12_v0 = vstv %s4827_s6 }
   0x2   :  { %13 = vst [vmem:[#allocation2] sm:$0x1] %v12_v0 }
   0x3   :  { %14 = vsyncpa [#allocation4], 0 }
   0x4   :  { %16 = vsyncpa [#allocation4 + $0x1], 0 }
   0x5   :  { %17 = vsyncpa [#allocation7], 0 }
   0x6   :  { %18 = vsyncpa [#allocation10], 0 }
   0x7   :  { %19 = vsyncpa [#allocation13], 0 }
   0x8   :  { %20 = vsyncpa [#allocation5], 0 }
   0x9   :  { %22 = vsyncpa [#allocation5 + $0x1], 0  ;;  %s4092_s26 = smov 0   ;;  %s4094_s27 = smov 0  }
   0xa   :  { %s4096_s28 = smov 0   ;;  %s4098_s29 = smov 0  }
   0xb LB: > { %s4113_s6 = sadd.s32 4294967295, %s4033_s29   ;;  %s2829_s30 = sadd.s32 4294967294, %s4033_s29   ;;  %s4033_s29 = sphi %s4098_s29, %s4896_s29   ;;  %s4029_s28 = sphi %s4096_s28, %s4895_s28   ;;  %s4025_s27 = sphi %s4094_s27, %s4894_s27   ;;  %s4021_s26 = sphi %s4092_s26, %s4893_s26  }
   0xc   : > { %s4117_s8 = sadd.s32 1, %s4033_s29   ;;  %s35_s9 = sadd.s32 1, %s4029_s28 }
   0xd   : > { %s32_s10 = ssub.s32 %s4033_s29, %s4117_s8  ;;  %p42_p0 = scmp.ne.s32.totalorder %s4029_s28, %s4025_s27 }
   0xe   : > { %p33_p1 = scmp.eq.s32.totalorder %s32_s10, 0  ;;  %p43_p2 = scmp.eq.s32.totalorder %s4033_s29, 0 }
   0xf   : > { %p48_p3 = scmp.ne.s32.totalorder %s4025_s27, %s4021_s26  ;;  %p4829_p4 = scmp.eq.s32.totalorder %s4113_s6, 0 }
  0x10   : > { %s4129_s11 = scalar_select %p33_p1, %s4029_s28, %s35_s9  }
  0x11   : > { %p4131_p5 = por %p43_p2, %p42_p0  ;;  %p4137_p6 = por %p4829_p4, %p48_p3 }
  0x12   : > { %p198_p7 = scmp.eq.s32.totalorder %s4113_s6, 1  ;;  %p204_p8 = scmp.eq.s32.totalorder %s2829_s30, 1 }
  0x13   : > { %s4837_s13 = scalar_select %p4137_p6, 1, 0 }
  0x14   : > { %p2830_p9 = scmp.ge.s32.totalorder %s4033_s29, 1  ;;  %p211_p10 = scmp.lt.s32.totalorder %s4033_s29, 3 }
  0x15   : > { %p4144_p11 = por %p198_p7, %p42_p0  ;;  %p4148_p12 = por %p204_p8, %p48_p3 }
  0x16   : > { %p4152_p13 = pnand %p2830_p9, %p211_p10  ;;  %s4035_s17 = smov [#allocation6]  }
  0x17   : > { %s4838_s14 = scalar_select %p4144_p11, 1, 0 }
  0x18   : > { %s4839_s15 = scalar_select %p4148_p12, 1, 0 }
  0x19   : > { %s4840_s16 = scalar_select %p4152_p13, 1, 0 }
  0x1a   : > { %p3585_p1 = pneg %p4152_p13  ;;  %s223_s18 = sshll.u32 %s4035_s17, 4  ;;  %s224_s18 = int_to_ptr.vmem [resolvable:$true] %s223_s18 }
  0x1b   : > { %s4036_s20 = smov [#allocation9]   ;;  %s3812_s23 = scalar_lea.vmem %s224_s18, 16384 }
  0x1c   : > { %p4160_p2 = pnand %p3585_p1, %p4829_p4  ;;  %s247_s21 = sshll.u32 %s4036_s20, 4  ;;  %s248_s21 = int_to_ptr.vmem [resolvable:$true] %s247_s21 }
  0x1d   : > { %p3813_p3 = scmp.ne.s32.totalorder %s224_s18, %s3812_s23  ;;  %p3820_p9 = scmp.lt.s32.totalorder %s224_s18, %s224_s18 }
  0x1e   : > { %p4166_p0 = pneg %p4160_p2  ;;  %p3821_p10 = scmp.lt.s32.totalorder %s3812_s23, %s3812_s23 }
  0x20   : > { %p3815_p7 = pnand %p3813_p3, %p4166_p0  ;;  %p3822_p1 = por %p3821_p10, %p3820_p9 }
  0x22   : > { %p3816_p8 = pneg %p3815_p7 }
  0x24   : > { %p3823_p4 = pnand %p3822_p1, %p3816_p8 }
  0x26   : > { %3826 = shalt.err (!%p3823_p4)
}
  0x27   : > { %s4037_s24 = smov 64   ;;  %s4038_s25 = smov 4  }
  0x28   : > { %s4843_s1 = sld [smem:[#allocation39_spill]]  ;;  %s3838_s10 = scalar_lea.vmem %s248_s21, 1024 }
  0x29   : > { %p3839_p12 = scmp.ne.s32.totalorder %s248_s21, %s3838_s10  ;;  %p3846_p7 = scmp.lt.s32.totalorder %s248_s21, %s248_s21 }
  0x2a   : > { %p3847_p6 = scmp.lt.s32.totalorder %s3838_s10, %s3838_s10 }
  0x2b   : > { %p3841_p11 = pnand %p3839_p12, %p4166_p0 }
  0x2c   : > { %p3848_p13 = por %p3847_p6, %p3846_p7 }
  0x2d   : > { %p3842_p3 = pneg %p3841_p11 }
  0x2e   : > { %3588 = dma.hbm_to_vmem [thread:$0]  (!%p4160_p2), %s4843_s1, 16384, %s224_s18, [#allocation7], %s4037_s24, %s4037_s24, %s4038_s25  }
  0x2f   : > { %p3849_p9 = pnand %p3848_p13, %p3842_p3 }
  0x31   : > { %3852 = shalt.err (!%p3849_p9)
}
  0x32   : > { %3594 = dma.hbm_to_vmem [thread:$0]  (!%p4160_p2), %s4824_s3, 1024, %s248_s21, [#allocation10], %s4037_s24, %s4037_s24, %s4038_s25  }
  0x33   : > { %s4039_s23 = smov [#allocation8]   ;;  %s4040_s18 = smov [#allocation11]  }
  0x34   : > { %s237_s30 = sshll.u32 %s4039_s23, 4  ;;  %s261_s9 = sshll.u32 %s4040_s18, 4  ;;  %s238_s30 = int_to_ptr.vmem [resolvable:$true] %s237_s30  ;;  %s262_s9 = int_to_ptr.vmem [resolvable:$true] %s261_s9 }
  0x35   : > { %s3864_s1 = scalar_lea.vmem %s238_s30, 16  ;;  %s3871_s10 = scalar_lea.vmem %s238_s30, 32 }
  0x36   : > { %p3865_p4 = scmp.ne.s32.totalorder %s238_s30, %s3864_s1  ;;  %p3872_p6 = scmp.lt.s32.totalorder %s238_s30, %s238_s30 }
  0x37   : > { %p3873_p13 = scmp.lt.s32.totalorder %s3871_s10, %s3864_s1 }
  0x38   : > { %p3867_p11 = pnand %p3865_p4, %p4166_p0 }
  0x39   : > { %p3874_p8 = por %p3873_p13, %p3872_p6 }
  0x3a   : > { %p3868_p12 = pneg %p3867_p11 }
  0x3c   : > { %p3875_p10 = pnand %p3874_p8, %p3868_p12 }
  0x3e   : > { %3878 = shalt.err (!%p3875_p10)
}
  0x3f   : > { %3591 = dma.hbm_to_vmem [thread:$0]  (!%p4160_p2), %s4823_s2, 16, %s238_s30, [#allocation7]  }
  0x40   : > { %s3890_s24 = scalar_lea.vmem %s262_s9, 16  ;;  %s3897_s25 = scalar_lea.vmem %s262_s9, 32 }
  0x41   : > { %p3891_p1 = scmp.ne.s32.totalorder %s262_s9, %s3890_s24  ;;  %p3898_p9 = scmp.lt.s32.totalorder %s262_s9, %s262_s9 }
  0x42   : > { %p3899_p4 = scmp.lt.s32.totalorder %s3897_s25, %s3890_s24 }
  0x43   : > { %p3893_p3 = pnand %p3891_p1, %p4166_p0 }
  0x44   : > { %p3900_p11 = por %p3899_p4, %p3898_p9 }
  0x45   : > { %p3894_p7 = pneg %p3893_p3 }
  0x47   : > { %p3901_p6 = pnand %p3900_p11, %p3894_p7 }
  0x49   : > { %3904 = shalt.err (!%p3901_p6)
}
  0x4a   : > { %3597 = dma.hbm_to_vmem [thread:$0]  (!%p4160_p2), %s4825_s4, 16, %s262_s9, [#allocation10]  }
  0x4b   : > { %s4041_s23 = smov [#allocation12]  }
  0x4c   : > { %s272_s30 = sshll.u32 %s4041_s23, 4  ;;  %s273_s30 = int_to_ptr.vmem [resolvable:$true] %s272_s30 }
  0x4d   : > { %s3916_s18 = scalar_lea.vmem %s273_s30, 16  ;;  %s3923_s10 = scalar_lea.vmem %s273_s30, 32 }
  0x4e   : > { %p3917_p12 = scmp.ne.s32.totalorder %s273_s30, %s3916_s18  ;;  %p3924_p10 = scmp.lt.s32.totalorder %s273_s30, %s273_s30 }
  0x4f   : > { %p3925_p1 = scmp.lt.s32.totalorder %s3923_s10, %s3916_s18 }
  0x50   : > { %p3919_p13 = pnand %p3917_p12, %p4166_p0 }
  0x51   : > { %p3926_p3 = por %p3925_p1, %p3924_p10 }
  0x52   : > { %p3920_p8 = pneg %p3919_p13 }
  0x54   : > { %p3927_p7 = pnand %p3926_p3, %p3920_p8 }
  0x56   : > { %3930 = shalt.err (!%p3927_p7)
}
  0x57   : > { %3600 = dma.hbm_to_vmem [thread:$0]  (!%p4160_p2), %s4826_s5, 16, %s273_s30, [#allocation13]  }
  0x58   : > { %p2836_p9 = scmp.ge.s32.totalorder %s4033_s29, 2 }
  0x5a   : > { %282 = sbr.rel (%p2836_p9) target bundleno = 129 (0x81), region = 40 }
  0x5f   : > { %285 = sbr.rel (!%p4131_p5) target bundleno = 129 (0x81), region = 44  ;;  %s286_s22 = sand.u32 (%p4131_p5), 1, %s4029_s28  }
  0x60   : > { %s291_s9 = smul.u32 (%p4131_p5), 13, %s4033_s29  ;;  %s4215_s20 = scalar_lea.sflag (%p4131_p5), [#allocation4], %s286_s22 }
  0x61   : > { %s3560_s24 = smul.u32 (%p4131_p5), 1664, %s286_s22 }
  0x62   : > { %s292_s25 = ssub.s32 (%p4131_p5), 25, %s291_s9 }
  0x63   : > { %p293_p0 = scmp.lt.s32.totalorder (%p4131_p5), %s292_s25, 13  ;;  %s290_s23 = scalar_lea.vmem (%p4131_p5), [#allocation3], %s3560_s24 }
  0x65   : > { %s4898_s25 = smov (!%p293_p0, %s292_s25), 13 }
  0x66   : > { %s4212_s19 = sshll.u32 %s4898_s25, 11 }
  0x67   : > { %s298_s1 = ssub.s32 26624, %s4212_s19 }
  0x68   : > { %299 = vsyncadd %s4215_s20, %s298_s1  ;;  %p2839_p5 = scmp.ne.s32.totalorder %s4212_s19, 0  ;;  %s2994_s12 = smul.u32 26624, %s4033_s29 }
  0x69   : > { %s305_s30 = sshll.u32 %s290_s23, 4  ;;  %s3935_s24 = scalar_lea.hbm %s4821_s0, 51200  ;;  %s4225_s30 = int_to_ptr.vmem [resolvable:$true] %s305_s30 }
  0x6a   : > { %s4223_s17 = scalar_lea.hbm %s4821_s0, %s2994_s12 }
  0x6b   : > { %s3931_s21 = scalar_lea.hbm %s4223_s17, %s4212_s19  ;;  %p3936_p6 = scmp.lt.s32.totalorder %s4223_s17, %s4821_s0 }
  0x6c   : > { %p3932_p2 = scmp.ne.s32.totalorder %s4223_s17, %s3931_s21  ;;  %p3937_p12 = scmp.lt.s32.totalorder %s3935_s24, %s3931_s21 }
  0x6e   : > { %p3933_p4 = pnand %p3932_p2, %p2839_p5  ;;  %p3938_p13 = por %p3937_p12, %p3936_p6 }
  0x70   : > { %p3934_p11 = pneg %p3933_p4 }
  0x72   : > { %p3939_p8 = pnand %p3938_p13, %p3934_p11 }
  0x74   : > { %3942 = shalt.err (!%p3939_p8)
}
  0x75   : > { %s3943_s23 = scalar_lea.vmem %s4225_s30, %s4212_s19  ;;  %s4042_s12 = smov [#allocation3]  }
  0x76   : > { %p3944_p10 = scmp.ne.s32.totalorder %s4225_s30, %s3943_s23  ;;  %s3947_s18 = sshll.u32 %s4042_s12, 4  ;;  %s3948_s18 = int_to_ptr.vmem [resolvable:$false] %s3947_s18 }
  0x77   : > { %s3949_s10 = scalar_lea.vmem %s3948_s18, 53248  ;;  %p3950_p7 = scmp.lt.s32.totalorder %s4225_s30, %s3948_s18 }
  0x78   : > { %p3945_p1 = pnand %p3944_p10, %p2839_p5  ;;  %p3951_p0 = scmp.lt.s32.totalorder %s3949_s10, %s3943_s23 }
  0x7a   : > { %p3946_p3 = pneg %p3945_p1  ;;  %p3952_p2 = por %p3951_p0, %p3950_p7 }
  0x7c   : > { %p3953_p4 = pnand %p3952_p2, %p3946_p3 }
  0x7e   : > { %3956 = shalt.err (!%p3953_p4)
}
  0x7f   : > { %s4043_s21 = smov 2048   ;;  %s4044_s22 = smov 128  }
  0x80   : > { %311 = dma.hbm_to_vmem [thread:$0]  (%p2839_p5), %s4223_s17, %s4212_s19, %s4225_s30, %s4215_s20, %s4043_s21, %s4043_s21, %s4044_s22  }
  0x81 PF: > { %p4844_p11 = scmp.ne.s32.totalorder %s4840_s16, 0 }
  0x83   : > { %317 = sbr.rel (%p4844_p11) target bundleno = 1141 (0x475), region = 48 }
  0x88   : > { %s4254_s9 = sand.u32 1, %s4025_s27   ;;  %p4845_p6 = scmp.ne.s32.totalorder %s4837_s13, 0 }
  0x89   : > { %s3561_s24 = smul.u32 1664, %s4254_s9  ;;  %s320_s25 = scalar_lea.sflag [#allocation4], %s4254_s9 }
  0x8b   : > { %s4258_s1 = scalar_lea.vmem [#allocation3], %s3561_s24 }
  0x8c   : > { %4000 = dma.done.wait (%p4845_p6), %s320_s25, 26624  }
  0x8d   : > { %4002 = vsyncadd (%p4845_p6), %s320_s25, 4294940672  ;;  %p4846_p5 = scmp.eq.s32.totalorder %s4113_s6, 0 }
  0x8f   : > { %4004 = dma.done.wait (%p4846_p5), [#allocation7], 16400   ;;  %p4847_p12 = pmov %p4846_p5 }
  0x90   : > { %p4848_p13 = pmov %p4846_p5 }
  0x91   : > { %4006 = vsyncadd (%p4847_p12), [#allocation7], 4294950896 }
  0x92   : > { %4008 = dma.done.wait (%p4848_p13), [#allocation10], 1040   ;;  %p4849_p8 = pmov %p4846_p5 }
  0x93   : > { %p4850_p10 = pmov %p4846_p5 }
  0x94   : > { %4010 = vsyncadd (%p4849_p8), [#allocation10], 4294966256 }
  0x95   : > { %4012 = dma.done.wait (%p4850_p10), [#allocation13], 16   ;;  %p4851_p1 = pmov %p4846_p5 }
  0x96   : > { %v3661_v1 = vld [vmem:[#allocation6 + $0x78] sm:$0xff]   ;;  %v3663_v3 = vld [vmem:[#allocation6 + $0x70] sm:$0xff]   ;;  %v3665_v5 = vld [vmem:[#allocation6 + $0x68] sm:$0xff]   ;;  %vm4046_vm0 = vmmov 0   ;;  %s2988_s13 = sshll.u32 %s4113_s6, 4  ;;  %s372_s16 = scalar_lea.vmem [#allocation14], %s4254_s9 }
  0x97   : > { %4014 = vsyncadd (%p4851_p1), [#allocation13], 4294967280  ;;  %v3662_v2 = vld [vmem:[#allocation6 + $0x38] sm:$0xff]   ;;  %3544 = vmatprep.subr.bf16.mxu1 %v3661_v1  ;;  %2995 = vmatprep.subr.bf16.mxu0 %v3661_v1  ;;  %v3664_v4 = vld [vmem:[#allocation6 + $0x30] sm:$0xff]   ;;  %s2715_s19 = sshll.u32 %s372_s16, 4  ;;  %vm2700_vm2 = vcmask 843776   ;;  %s2713_s17 = scalar_lea.hbm %s4828_s7, %s2988_s13  ;;  %s2716_s19 = int_to_ptr.vmem [resolvable:$true] %s2715_s19 }
  0x98   : > { %3552 = vmatpush3.bf16.msra.mxu1 %v3662_v2  ;;  %2996 = vmatpush3.bf16.msra.mxu0 %v3662_v2  ;;  %v3666_v6 = vld [vmem:[#allocation6 + $0x28] sm:$0xff]   ;;  %v3667_v7 = vld [vmem:[#allocation6 + $0x60] sm:$0xff]   ;;  %v3669_v9 = vld [vmem:[#allocation6 + $0x58] sm:$0xff]   ;;  %s2703_s23 = scalar_lea.sflag [#allocation5], %s4254_s9  ;;  %s3957_s12 = scalar_lea.vmem %s2716_s19, 16 }
  0x99   : > { %3545 = vmatprep.subr.bf16.mxu1 %v3663_v3  ;;  %2997 = vmatprep.subr.bf16.mxu0 %v3663_v3  ;;  %v3668_v8 = vld [vmem:[#allocation6 + $0x20] sm:$0xff]   ;;  %v3670_v10 = vld [vmem:[#allocation6 + $0x18] sm:$0xff]   ;;  %v3671_v11 = vld [vmem:[#allocation6 + $0x50] sm:$0xff]   ;;  %p3958_p3 = scmp.ne.s32.totalorder %s2716_s19, %s3957_s12  ;;  %p4891_p7 = scmp.ne.s32.totalorder %s4838_s14, 0 }
  0x9a   : > { %v509_v12 = vld [vmem:[%s4258_s1 + $0x408] sm:$0xff]  ;;  %v3672_v17 = vld [vmem:[#allocation6 + $0x10] sm:$0xff]   ;;  %v3675_v21 = vld [vmem:[#allocation6 + $0x40] sm:$0xff]   ;;  %s4048_s6 = smov [#allocation14]  }
  0x9b   : > { %v525_v13 = vld [vmem:[%s4258_s1 + $0x488] sm:$0xff]  ;;  %v3676_v22 = vld [vmem:[#allocation6] sm:$0xff]   ;;  %v3677_v27 = vld [vmem:[#allocation6 + $0xf8] sm:$0xff]   ;;  %p3959_p0 = pnand %p3958_p3, %p4891_p7  ;;  %s3961_s18 = sshll.u32 %s4048_s6, 4  ;;  %s3962_s18 = int_to_ptr.vmem [resolvable:$false] %s3961_s18 }
  0x9c   : > { %3553 = vmatpush3.bf16.msra.mxu1 %v3664_v4  ;;  %2998 = vmatpush3.bf16.msra.mxu0 %v3664_v4  ;;  %v653_v14 = vpack.c.bf16 %v525_v13, %v509_v12  ;;  %v381_v15 = vld [vmem:[%s4258_s1 + $0x8] sm:$0xff]  ;;  %v508_v23 = vld [vmem:[%s4258_s1 + $0x400] sm:$0xff]  ;;  %v3679_v28 = vld [vmem:[#allocation6 + $0x178] sm:$0xff]   ;;  %s3963_s10 = scalar_lea.vmem %s3962_s18, 32  ;;  %p3964_p4 = scmp.lt.s32.totalorder %s2716_s19, %s3962_s18 }
  0x9d   : > { %3546 = vmatprep.subr.bf16.mxu1 %v3665_v5  ;;  %2999 = vmatprep.subr.bf16.mxu0 %v3665_v5  ;;  %v397_v16 = vld [vmem:[%s4258_s1 + $0x88] sm:$0xff]  ;;  %v524_v24 = vld [vmem:[%s4258_s1 + $0x480] sm:$0xff]  ;;  %v3678_v29 = vld [vmem:[#allocation6 + $0xb8] sm:$0xff]   ;;  %p3960_p2 = pneg %p3959_p0  ;;  %p3965_p11 = scmp.lt.s32.totalorder %s3963_s10, %s3957_s12 }
  0x9e   : > { %v589_v18 = vpack.c.bf16 %v397_v16, %v381_v15  ;;  %v3673_v19 = vld [vmem:[#allocation6 + $0x48] sm:$0xff]   ;;  %1795 = vmatprep.mubr.bf16.mxu1 %v653_v14  ;;  %v380_v25 = vld [vmem:[%s4258_s1] sm:$0xff]  ;;  %v3680_v30 = vld [vmem:[#allocation6 + $0x138] sm:$0xff]   ;;  %v652_v32 = vpack.c.bf16 %v524_v24, %v508_v23 }
  0x9f   : > { %v3674_v20 = vld [vmem:[#allocation6 + $0x8] sm:$0xff]   ;;  %v396_v26 = vld [vmem:[%s4258_s1 + $0x80] sm:$0xff]  ;;  %v3681_v37 = vld [vmem:[#allocation6 + $0xf0] sm:$0xff]   ;;  %p3966_p6 = por %p3965_p11, %p3964_p4 }
  0xa0   : > { %3554 = vmatpush3.bf16.msra.mxu1 %v3666_v6  ;;  %3000 = vmatpush3.bf16.msra.mxu0 %v3666_v6  ;;  %v413_v31 = vld [vmem:[%s4258_s1 + $0x108] sm:$0xff]  ;;  %v588_v33 = vpack.c.bf16 %v396_v26, %v380_v25  ;;  %v3683_v38 = vld [vmem:[#allocation6 + $0x170] sm:$0xff]   ;;  %v412_v43 = vld [vmem:[%s4258_s1 + $0x100] sm:$0xff] }
  0xa1   : > { %3547 = vmatprep.subr.bf16.mxu1 %v3667_v7  ;;  %3001 = vmatprep.subr.bf16.mxu0 %v3667_v7  ;;  %v429_v34 = vld [vmem:[%s4258_s1 + $0x188] sm:$0xff]  ;;  %v3682_v39 = vld [vmem:[#allocation6 + $0xb0] sm:$0xff]   ;;  %v428_v44 = vld [vmem:[%s4258_s1 + $0x180] sm:$0xff]  ;;  %p3967_p5 = pnand %p3966_p6, %p3960_p2 }
  0xa2   : > { %1763 = vmatprep.mubr.bf16.mxu0 %v589_v18  ;;  %v541_v35 = vld [vmem:[%s4258_s1 + $0x508] sm:$0xff]  ;;  %v3684_v40 = vld [vmem:[#allocation6 + $0x130] sm:$0xff]   ;;  %v605_v41 = vpack.c.bf16 %v429_v34, %v413_v31  ;;  %v540_v46 = vld [vmem:[%s4258_s1 + $0x500] sm:$0xff]  ;;  %v604_v50 = vpack.c.bf16 %v428_v44, %v412_v43 }
  0xa3   : > { %v557_v36 = vld [vmem:[%s4258_s1 + $0x588] sm:$0xff]  ;;  %v556_v47 = vld [vmem:[%s4258_s1 + $0x580] sm:$0xff]  ;;  %v3693_v63 = vld [vmem:[#allocation6 + $0xd8] sm:$0xff]  }
  0xa4   : > { %3555 = vmatpush3.bf16.msra.mxu1 %v3668_v8  ;;  %3002 = vmatpush3.bf16.msra.mxu0 %v3668_v8  ;;  %v669_v42 = vpack.c.bf16 %v557_v36, %v541_v35  ;;  %v3685_v45 = vld [vmem:[#allocation6 + $0xe8] sm:$0xff]   ;;  %v668_v51 = vpack.c.bf16 %v556_v47, %v540_v46  ;;  %v3689_v56 = vld [vmem:[#allocation6 + $0xe0] sm:$0xff]   ;;  %v3695_v2 = vld [vmem:[#allocation6 + $0x158] sm:$0xff]  }
  0xa5   : > { %3548 = vmatprep.subr.bf16.mxu1 %v3669_v9  ;;  %3003 = vmatprep.subr.bf16.mxu0 %v3669_v9  ;;  %v3687_v48 = vld [vmem:[#allocation6 + $0x168] sm:$0xff]   ;;  %v3691_v57 = vld [vmem:[#allocation6 + $0x160] sm:$0xff]   ;;  %v3694_v3 = vld [vmem:[#allocation6 + $0x98] sm:$0xff]  }
  0xa6   : > { %v3686_v49 = vld [vmem:[#allocation6 + $0xa8] sm:$0xff]   ;;  %v3690_v58 = vld [vmem:[#allocation6 + $0xa0] sm:$0xff]   ;;  %v3696_v6 = vld [vmem:[#allocation6 + $0x118] sm:$0xff]  }
  0xa7   : > { %v3688_v52 = vld [vmem:[#allocation6 + $0x128] sm:$0xff]   ;;  %v3692_v59 = vld [vmem:[#allocation6 + $0x120] sm:$0xff]   ;;  %v3697_v7 = vld [vmem:[#allocation6 + $0xd0] sm:$0xff]  }
  0xa8   : > { %3556 = vmatpush3.bf16.msra.mxu1 %v3670_v10  ;;  %3004 = vmatpush3.bf16.msra.mxu0 %v3670_v10  ;;  %v445_v53 = vld [vmem:[%s4258_s1 + $0x208] sm:$0xff]  ;;  %v444_v62 = vld [vmem:[%s4258_s1 + $0x200] sm:$0xff]  ;;  %v3699_v8 = vld [vmem:[#allocation6 + $0x150] sm:$0xff]  }
  0xa9   : > { %3549 = vmatprep.subr.bf16.mxu1 %v3671_v11  ;;  %3005 = vmatprep.subr.bf16.mxu0 %v3671_v11  ;;  %v461_v54 = vld [vmem:[%s4258_s1 + $0x288] sm:$0xff]  ;;  %v460_v0 = vld [vmem:[%s4258_s1 + $0x280] sm:$0xff]  ;;  %v3698_v11 = vld [vmem:[#allocation6 + $0x90] sm:$0xff]  }
  0xaa   : > { %v573_v55 = vld [vmem:[%s4258_s1 + $0x608] sm:$0xff]  ;;  %v621_v60 = vpack.c.bf16 %v461_v54, %v445_v53  ;;  %v572_v1 = vld [vmem:[%s4258_s1 + $0x600] sm:$0xff]  ;;  %v620_v4 = vpack.c.bf16 %v460_v0, %v444_v62  ;;  %v3700_v12 = vld [vmem:[#allocation6 + $0x110] sm:$0xff]  }
  0xab   : > { %v685_v61 = vpack.c.bf16 %v573_v55, %v573_v55  ;;  %v684_v5 = vpack.c.bf16 %v572_v1, %v572_v1  ;;  %v477_v9 = vld [vmem:[%s4258_s1 + $0x308] sm:$0xff]  ;;  %v476_v15 = vld [vmem:[%s4258_s1 + $0x300] sm:$0xff]  ;;  %v383_v23 = vld [vmem:[%s4258_s1 + $0x18] sm:$0xff] }
  0xac   : > { %3557 = vmatpush3.bf16.msra.mxu1 %v3672_v17  ;;  %3006 = vmatpush3.bf16.msra.mxu0 %v3672_v17  ;;  %v493_v10 = vld [vmem:[%s4258_s1 + $0x388] sm:$0xff]  ;;  %v492_v16 = vld [vmem:[%s4258_s1 + $0x380] sm:$0xff]  ;;  %v399_v24 = vld [vmem:[%s4258_s1 + $0x98] sm:$0xff] }
  0xad   : > { %3550 = vmatprep.subr.bf16.mxu1 %v3673_v19  ;;  %3007 = vmatprep.subr.bf16.mxu0 %v3673_v19  ;;  %v637_v13 = vpack.c.bf16 %v493_v10, %v477_v9  ;;  %v3701_v14 = vld [vmem:[#allocation6 + $0xc8] sm:$0xff]   ;;  %v3706_v25 = vld [vmem:[#allocation6 + $0x80] sm:$0xff]   ;;  %v591_v26 = vpack.c.bf16 %v399_v24, %v383_v23  ;;  %v415_v36 = vld [vmem:[%s4258_s1 + $0x118] sm:$0xff] }
  0xae   : > { %v3703_v17 = vld [vmem:[#allocation6 + $0x148] sm:$0xff]   ;;  %v384_v34 = vld [vmem:[%s4258_s1 + $0x20] sm:$0xff]  ;;  %v414_v44 = vld [vmem:[%s4258_s1 + $0x110] sm:$0xff] }
  0xaf   : > { %v3702_v18 = vld [vmem:[#allocation6 + $0x88] sm:$0xff]   ;;  %v400_v35 = vld [vmem:[%s4258_s1 + $0xa0] sm:$0xff]  ;;  %v3712_v46 = vld [vmem:[#allocation6 + $0x1b0] sm:$0xff]  }
  0xb0   : > { %3558 = vmatpush3.bf16.msra.mxu1 %v3674_v20  ;;  %3008 = vmatpush3.bf16.msra.mxu0 %v3674_v20  ;;  %v3704_v19 = vld [vmem:[#allocation6 + $0x108] sm:$0xff]   ;;  %v636_v20 = vpack.c.bf16 %v492_v16, %v476_v15  ;;  %v463_v53 = vld [vmem:[%s4258_s1 + $0x298] sm:$0xff]  ;;  %v446_v62 = vld [vmem:[%s4258_s1 + $0x210] sm:$0xff] }
  0xb1   : > { %3551 = vmatprep.subr.bf16.mxu1 %v3675_v21  ;;  %3009 = vmatprep.subr.bf16.mxu0 %v3675_v21  ;;  %v3705_v21 = vld [vmem:[#allocation6 + $0xc0] sm:$0xff]   ;;  %v401_v31 = vld [vmem:[%s4258_s1 + $0xa8] sm:$0xff]  ;;  %v3721_v15 = vld [vmem:[#allocation6 + $0x270] sm:$0xff]  }
  0xb2   : > { %v417_v43 = vld [vmem:[%s4258_s1 + $0x128] sm:$0xff]  ;;  %v448_v0 = vld [vmem:[%s4258_s1 + $0x220] sm:$0xff]  ;;  %v478_v16 = vld [vmem:[%s4258_s1 + $0x310] sm:$0xff] }
  0xb3   : > { %v433_v47 = vld [vmem:[%s4258_s1 + $0x1a8] sm:$0xff]  ;;  %v464_v1 = vld [vmem:[%s4258_s1 + $0x2a0] sm:$0xff] }
  0xb4   : > { %3559 = vmatpush3.bf16.msra.mxu1 %v3676_v22  ;;  %3010 = vmatpush3.bf16.msra.mxu0 %v3676_v22  ;;  %v3707_v22 = vld [vmem:[#allocation6 + $0x140] sm:$0xff]   ;;  %v449_v54 = vld [vmem:[%s4258_s1 + $0x228] sm:$0xff]  ;;  %v624_v10 = vpack.c.bf16 %v464_v1, %v448_v0 }
  0xb5   : > { %3053 = vmatprep.subr.bf16.mxu1 %v3677_v27  ;;  %3111 = vmatprep.subr.bf16.mxu0 %v3679_v28  ;;  %v3708_v27 = vld [vmem:[#allocation6 + $0x100] sm:$0xff]   ;;  %v382_v28 = vld [vmem:[%s4258_s1 + $0x10] sm:$0xff]  ;;  %v465_v55 = vld [vmem:[%s4258_s1 + $0x2a8] sm:$0xff] }
  0xb6   : > { %v513_v23 = vld [vmem:[%s4258_s1 + $0x428] sm:$0xff] }
  0xb7   : > { %1796 = vmatmul.mubr.bf16.vlgmr.msra.gmra.mxu1 %v652_v32  ;;  %1764 = vmatmul.mubr.bf16.vlgmr.msra.gmra.mxu0 %v588_v33  ;;  %v3709_v32 = vld [vmem:[#allocation6 + $0x1f8] sm:$0xff]   ;;  %v529_v24 = vld [vmem:[%s4258_s1 + $0x4a8] sm:$0xff] }
  0xb8   : > { %3054 = vmatpush3.bf16.msra.mxu1 %v3678_v29  ;;  %3112 = vmatpush3.bf16.msra.mxu0 %v3680_v30  ;;  %v398_v29 = vld [vmem:[%s4258_s1 + $0x90] sm:$0xff]  ;;  %v385_v30 = vld [vmem:[%s4258_s1 + $0x28] sm:$0xff] }
  0xb9   : > { %3055 = vmatprep.subr.bf16.mxu1 %v3681_v37  ;;  %3113 = vmatprep.subr.bf16.mxu0 %v3683_v38  ;;  %v593_v33 = vpack.c.bf16 %v401_v31, %v385_v30  ;;  %v431_v37 = vld [vmem:[%s4258_s1 + $0x198] sm:$0xff]  ;;  %v590_v38 = vpack.c.bf16 %v398_v29, %v382_v28  ;;  %v3725_v29 = vld [vmem:[#allocation6 + $0x228] sm:$0xff]   ;;  %v657_v31 = vpack.c.bf16 %v529_v24, %v513_v23 }
  0xba   : > { %1771 = vmatprep.mubr.bf16.mxu0 %v605_v41  ;;  %1803 = vmatprep.mubr.bf16.mxu1 %v669_v42  ;;  %v607_v41 = vpack.c.bf16 %v431_v37, %v415_v36  ;;  %v3711_v42 = vld [vmem:[#allocation6 + $0x1f0] sm:$0xff]   ;;  %v512_v36 = vld [vmem:[%s4258_s1 + $0x420] sm:$0xff]  ;;  %v437_v23 = vld [vmem:[%s4258_s1 + $0x1c8] sm:$0xff] }
  0xbb   : > { %v3728_v37 = vld [vmem:[#allocation6 + $0x220] sm:$0xff]  }
  0xbc   : > { %3056 = vmatpush3.bf16.msra.mxu1 %v3682_v39  ;;  %3114 = vmatpush3.bf16.msra.mxu0 %v3684_v40  ;;  %v592_v39 = vpack.c.bf16 %v400_v35, %v384_v34  ;;  %v3710_v40 = vld [vmem:[#allocation6 + $0x1b8] sm:$0xff]   ;;  %v510_v34 = vld [vmem:[%s4258_s1 + $0x410] sm:$0xff] }
  0xbd   : > { %3057 = vmatprep.subr.bf16.mxu1 %v3685_v45  ;;  %3115 = vmatprep.subr.bf16.mxu0 %v3687_v48  ;;  %v430_v45 = vld [vmem:[%s4258_s1 + $0x190] sm:$0xff]  ;;  %v609_v48 = vpack.c.bf16 %v433_v47, %v417_v43  ;;  %v3729_v43 = vld [vmem:[#allocation6 + $0x1c8] sm:$0xff]  }
  0xbe   : > { %v526_v35 = vld [vmem:[%s4258_s1 + $0x490] sm:$0xff] }
  0xbf   : > { %1772 = vmatmul.mubr.bf16.gmra.mxu0 %v604_v50  ;;  %1804 = vmatmul.mubr.bf16.gmra.mxu1 %v668_v51  ;;  %v432_v50 = vld [vmem:[%s4258_s1 + $0x1a0] sm:$0xff]  ;;  %v3713_v51 = vld [vmem:[#allocation6 + $0x1e8] sm:$0xff]  }
  0xc0   : > { %3058 = vmatpush3.bf16.msra.mxu1 %v3686_v49  ;;  %3116 = vmatpush3.bf16.msra.mxu0 %v3688_v52  ;;  %v416_v49 = vld [vmem:[%s4258_s1 + $0x120] sm:$0xff]  ;;  %v447_v52 = vld [vmem:[%s4258_s1 + $0x218] sm:$0xff] }
  0xc1   : > { %3059 = vmatprep.subr.bf16.mxu1 %v3689_v56  ;;  %3117 = vmatprep.subr.bf16.mxu0 %v3691_v57  ;;  %v606_v56 = vpack.c.bf16 %v430_v45, %v414_v44  ;;  %v608_v57 = vpack.c.bf16 %v432_v50, %v416_v49  ;;  %v654_v44 = vpack.c.bf16 %v526_v35, %v510_v34  ;;  %v3731_v49 = vld [vmem:[#allocation6 + $0x188] sm:$0xff]   ;;  %v3732_v50 = vld [vmem:[#allocation6 + $0x218] sm:$0xff]   ;;  %v436_v34 = vld [vmem:[%s4258_s1 + $0x1c0] sm:$0xff] }
  0xc2   : > { %1779 = vmatprep.mubr.bf16.mxu0 %v621_v60  ;;  %1811 = vmatprep.mubr.bf16.mxu1 %v685_v61  ;;  %v625_v60 = vpack.c.bf16 %v465_v55, %v449_v54  ;;  %v3715_v61 = vld [vmem:[#allocation6 + $0x1e0] sm:$0xff]   ;;  %v3733_v54 = vld [vmem:[#allocation6 + $0x250] sm:$0xff]   ;;  %v3745_v35 = vld [vmem:[#allocation6 + $0x2e8] sm:$0xff]  }
  0xc3   : > { %v560_v55 = vld [vmem:[%s4258_s1 + $0x5a0] sm:$0xff] }
  0xc4   : > { %3060 = vmatpush3.bf16.msra.mxu1 %v3690_v58  ;;  %3118 = vmatpush3.bf16.msra.mxu0 %v3692_v59  ;;  %v623_v58 = vpack.c.bf16 %v463_v53, %v447_v52  ;;  %v3714_v59 = vld [vmem:[#allocation6 + $0x1a8] sm:$0xff]   ;;  %v558_v52 = vld [vmem:[%s4258_s1 + $0x590] sm:$0xff]  ;;  %v544_v53 = vld [vmem:[%s4258_s1 + $0x520] sm:$0xff] }
  0xc5   : > { %3061 = vmatprep.subr.bf16.mxu1 %v3693_v63  ;;  %3119 = vmatprep.subr.bf16.mxu0 %v3695_v2  ;;  %v462_v63 = vld [vmem:[%s4258_s1 + $0x290] sm:$0xff]  ;;  %v3716_v2 = vld [vmem:[#allocation6 + $0x1a0] sm:$0xff]  }
  0xc6   : > { %v622_v9 = vpack.c.bf16 %v462_v63, %v446_v62  ;;  %v672_v62 = vpack.c.bf16 %v560_v55, %v544_v53  ;;  %v3737_v63 = vld [vmem:[#allocation6 + $0x248] sm:$0xff]   ;;  %v3748_v53 = vld [vmem:[#allocation6 + $0x2a0] sm:$0xff]   ;;  %v499_v55 = vld [vmem:[%s4258_s1 + $0x3b8] sm:$0xff] }
  0xc7   : > { %1780 = vmatmul.mubr.bf16.gmra.mxu0 %v620_v4  ;;  %1812 = vmatmul.mubr.bf16.gmra.mxu1 %v684_v5  ;;  %v495_v4 = vld [vmem:[%s4258_s1 + $0x398] sm:$0xff]  ;;  %v481_v5 = vld [vmem:[%s4258_s1 + $0x328] sm:$0xff] }
  0xc8   : > { %3062 = vmatpush3.bf16.msra.mxu1 %v3694_v3  ;;  %3120 = vmatpush3.bf16.msra.mxu0 %v3696_v6  ;;  %v479_v3 = vld [vmem:[%s4258_s1 + $0x318] sm:$0xff]  ;;  %v497_v6 = vld [vmem:[%s4258_s1 + $0x3a8] sm:$0xff] }
  0xc9   : > { %3063 = vmatprep.subr.bf16.mxu1 %v3697_v7  ;;  %3121 = vmatprep.subr.bf16.mxu0 %v3699_v8  ;;  %v3717_v7 = vld [vmem:[#allocation6 + $0x278] sm:$0xff]  }
  0xca   : > { %1787 = vmatprep.mubr.bf16.mxu0 %v637_v13  ;;  %1851 = vmatprep.mubr.bf16.mxu1 %v591_v26  ;;  %v3718_v8 = vld [vmem:[#allocation6 + $0x238] sm:$0xff]   ;;  %v641_v13 = vpack.c.bf16 %v497_v6, %v481_v5  ;;  %v3724_v26 = vld [vmem:[#allocation6 + $0x1d0] sm:$0xff]   ;;  %v3739_v5 = vld [vmem:[#allocation6 + $0x240] sm:$0xff]  }
  0xcb   : > { %v387_v6 = vld [vmem:[%s4258_s1 + $0x38] sm:$0xff] }
  0xcc   : > { %3064 = vmatpush3.bf16.msra.mxu1 %v3698_v11  ;;  %3122 = vmatpush3.bf16.msra.mxu0 %v3700_v12  ;;  %v3719_v11 = vld [vmem:[#allocation6 + $0x1d8] sm:$0xff]   ;;  %v639_v12 = vpack.c.bf16 %v495_v4, %v479_v3  ;;  %v574_v3 = vld [vmem:[%s4258_s1 + $0x610] sm:$0xff]  ;;  %v576_v4 = vld [vmem:[%s4258_s1 + $0x620] sm:$0xff] }
  0xcd   : > { %3065 = vmatprep.subr.bf16.mxu1 %v3701_v14  ;;  %3123 = vmatprep.subr.bf16.mxu0 %v3703_v17  ;;  %v3720_v14 = vld [vmem:[#allocation6 + $0x198] sm:$0xff]   ;;  %v494_v17 = vld [vmem:[%s4258_s1 + $0x390] sm:$0xff] }
  0xcf   : > { %1788 = vmatmul.mubr.bf16.gmra.mxu0 %v636_v20  ;;  %v496_v20 = vld [vmem:[%s4258_s1 + $0x3a0] sm:$0xff] }
  0xd0   : > { %3066 = vmatpush3.bf16.msra.mxu1 %v3702_v18  ;;  %3124 = vmatpush3.bf16.msra.mxu0 %v3704_v19  ;;  %v3722_v18 = vld [vmem:[#allocation6 + $0x230] sm:$0xff]   ;;  %v480_v19 = vld [vmem:[%s4258_s1 + $0x320] sm:$0xff] }
  0xd1   : > { %3067 = vmatprep.subr.bf16.mxu1 %v3705_v21  ;;  %3125 = vmatprep.subr.bf16.mxu0 %v3707_v22  ;;  %v511_v21 = vld [vmem:[%s4258_s1 + $0x418] sm:$0xff]  ;;  %v640_v28 = vpack.c.bf16 %v496_v20, %v480_v19  ;;  %v404_v19 = vld [vmem:[%s4258_s1 + $0xc0] sm:$0xff] }
  0xd2   : > { %1939 = vmatprep.mubr.bf16.mxu0 %v593_v33  ;;  %v527_v22 = vld [vmem:[%s4258_s1 + $0x498] sm:$0xff]  ;;  %v3727_v33 = vld [vmem:[#allocation6 + $0x260] sm:$0xff]  }
  0xd3   : > { %v655_v30 = vpack.c.bf16 %v527_v22, %v511_v21  ;;  %v419_v20 = vld [vmem:[%s4258_s1 + $0x138] sm:$0xff]  ;;  %v421_v22 = vld [vmem:[%s4258_s1 + $0x148] sm:$0xff] }
  0xd4   : > { %3068 = vmatpush3.bf16.msra.mxu1 %v3706_v25  ;;  %3126 = vmatpush3.bf16.msra.mxu0 %v3708_v27  ;;  %v3723_v25 = vld [vmem:[#allocation6 + $0x268] sm:$0xff]   ;;  %v638_v27 = vpack.c.bf16 %v494_v17, %v478_v16  ;;  %v386_v16 = vld [vmem:[%s4258_s1 + $0x30] sm:$0xff]  ;;  %v435_v21 = vld [vmem:[%s4258_s1 + $0x1b8] sm:$0xff] }
  0xd5   : > { %3169 = vmatprep.subr.bf16.mxu1 %v3709_v32  ;;  %3227 = vmatprep.subr.bf16.mxu0 %v3717_v7  ;;  %v3726_v32 = vld [vmem:[#allocation6 + $0x190] sm:$0xff]   ;;  %v403_v7 = vld [vmem:[%s4258_s1 + $0xb8] sm:$0xff] }
  0xd6   : > { %v402_v17 = vld [vmem:[%s4258_s1 + $0xb0] sm:$0xff] }
  0xd7   : > { %1852 = vmatmul.mubr.bf16.vlgmr.msra.gmra.mxu1 %v590_v38  ;;  %1940 = vmatmul.mubr.bf16.vlgmr.msra.gmra.mxu0 %v592_v39  ;;  %v528_v38 = vld [vmem:[%s4258_s1 + $0x4a0] sm:$0xff]  ;;  %v543_v39 = vld [vmem:[%s4258_s1 + $0x518] sm:$0xff]  ;;  %v594_v24 = vpack.c.bf16 %v402_v17, %v386_v16  ;;  %v3761_v17 = vld [vmem:[#allocation6 + $0x2c8] sm:$0xff]  }
  0xd8   : > { %3170 = vmatpush3.bf16.msra.mxu1 %v3710_v40  ;;  %1859 = vmatprep.mubr.bf16.mxu1 %v607_v41  ;;  %v559_v40 = vld [vmem:[%s4258_s1 + $0x598] sm:$0xff]  ;;  %v545_v41 = vld [vmem:[%s4258_s1 + $0x528] sm:$0xff]  ;;  %v656_v45 = vpack.c.bf16 %v528_v38, %v512_v36 }
  0xd9   : > { %3171 = vmatprep.subr.bf16.mxu1 %v3711_v42  ;;  %1947 = vmatprep.mubr.bf16.mxu0 %v609_v48  ;;  %v561_v42 = vld [vmem:[%s4258_s1 + $0x5a8] sm:$0xff]  ;;  %v671_v47 = vpack.c.bf16 %v559_v40, %v543_v39  ;;  %v451_v36 = vld [vmem:[%s4258_s1 + $0x238] sm:$0xff] }
  0xda   : > { %3228 = vmatpush3.bf16.msra.mxu0 %v3718_v8  ;;  %v673_v48 = vpack.c.bf16 %v561_v42, %v545_v41  ;;  %v3740_v8 = vld [vmem:[#allocation6 + $0x200] sm:$0xff]   ;;  %v453_v38 = vld [vmem:[%s4258_s1 + $0x248] sm:$0xff]  ;;  %v3749_v40 = vld [vmem:[#allocation6 + $0x378] sm:$0xff]  }
  0xdb   : > { %3229 = vmatprep.subr.bf16.mxu0 %v3721_v15  ;;  %v469_v39 = vld [vmem:[%s4258_s1 + $0x2c8] sm:$0xff] }
  0xdc   : > { %3172 = vmatpush3.bf16.msra.mxu1 %v3712_v46  ;;  %v3730_v46 = vld [vmem:[#allocation6 + $0x258] sm:$0xff]  }
  0xdd   : > { %3173 = vmatprep.subr.bf16.mxu1 %v3713_v51  ;;  %v542_v51 = vld [vmem:[%s4258_s1 + $0x510] sm:$0xff] }
  0xde   : > { %3230 = vmatpush3.bf16.msra.mxu0 %v3722_v18  ;;  %v388_v18 = vld [vmem:[%s4258_s1 + $0x40] sm:$0xff] }
  0xdf   : > { %1860 = vmatmul.mubr.bf16.gmra.mxu1 %v606_v56  ;;  %1948 = vmatmul.mubr.bf16.gmra.mxu0 %v608_v57  ;;  %v575_v56 = vld [vmem:[%s4258_s1 + $0x618] sm:$0xff]  ;;  %v3734_v57 = vld [vmem:[#allocation6 + $0x210] sm:$0xff]  }
  0xe0   : > { %1867 = vmatprep.mubr.bf16.mxu1 %v623_v58  ;;  %3174 = vmatpush3.bf16.msra.mxu1 %v3714_v59  ;;  %v577_v58 = vld [vmem:[%s4258_s1 + $0x628] sm:$0xff]  ;;  %v3735_v59 = vld [vmem:[#allocation6 + $0x1c0] sm:$0xff]   ;;  %v687_v0 = vpack.c.bf16 %v575_v56, %v575_v56  ;;  %v3754_v56 = vld [vmem:[#allocation6 + $0x330] sm:$0xff]  }
  0xe1   : > { %1955 = vmatprep.mubr.bf16.mxu0 %v625_v60  ;;  %3175 = vmatprep.subr.bf16.mxu1 %v3715_v61  ;;  %v3736_v60 = vld [vmem:[#allocation6 + $0x180] sm:$0xff]   ;;  %v670_v61 = vpack.c.bf16 %v558_v52, %v542_v51  ;;  %v689_v1 = vpack.c.bf16 %v577_v58, %v577_v58  ;;  %v3753_v52 = vld [vmem:[#allocation6 + $0x370] sm:$0xff]   ;;  %v501_v58 = vld [vmem:[%s4258_s1 + $0x3c8] sm:$0xff] }
  0xe2   : > { %3231 = vmatprep.subr.bf16.mxu0 %v3723_v25  ;;  %v596_v25 = vpack.c.bf16 %v404_v19, %v388_v18  ;;  %v468_v51 = vld [vmem:[%s4258_s1 + $0x2c0] sm:$0xff] }
  0xe3   : > { %3232 = vmatpush3.bf16.msra.mxu0 %v3725_v29  ;;  %v613_v29 = vpack.c.bf16 %v437_v23, %v421_v22  ;;  %v514_v22 = vld [vmem:[%s4258_s1 + $0x430] sm:$0xff] }
  0xe4   : > { %3176 = vmatpush3.bf16.msra.mxu1 %v3716_v2  ;;  %3233 = vmatprep.subr.bf16.mxu0 %v3727_v33  ;;  %v3738_v2 = vld [vmem:[#allocation6 + $0x208] sm:$0xff]   ;;  %v420_v33 = vld [vmem:[%s4258_s1 + $0x140] sm:$0xff]  ;;  %v530_v23 = vld [vmem:[%s4258_s1 + $0x4b0] sm:$0xff] }
  0xe5   : > { %3177 = vmatprep.subr.bf16.mxu1 %v3719_v11  ;;  %v405_v11 = vld [vmem:[%s4258_s1 + $0xc8] sm:$0xff]  ;;  %v612_v42 = vpack.c.bf16 %v436_v34, %v420_v33  ;;  %v3767_v33 = vld [vmem:[#allocation6 + $0x2c0] sm:$0xff]   ;;  %v658_v34 = vpack.c.bf16 %v530_v23, %v514_v22 }
  0xe6   : > { %v457_v22 = vld [vmem:[%s4258_s1 + $0x268] sm:$0xff] }
  0xe7   : > { %1868 = vmatmul.mubr.bf16.gmra.mxu1 %v622_v9  ;;  %1956 = vmatmul.mubr.bf16.gmra.mxu0 %v624_v10  ;;  %v3741_v9 = vld [vmem:[#allocation6 + $0x2f8] sm:$0xff]   ;;  %v389_v10 = vld [vmem:[%s4258_s1 + $0x48] sm:$0xff] }
  0xe8   : > { %1875 = vmatprep.mubr.bf16.mxu1 %v639_v12  ;;  %1963 = vmatprep.mubr.bf16.mxu0 %v641_v13  ;;  %v686_v12 = vpack.c.bf16 %v574_v3, %v574_v3  ;;  %v688_v13 = vpack.c.bf16 %v576_v4, %v576_v4  ;;  %v597_v15 = vpack.c.bf16 %v405_v11, %v389_v10  ;;  %v482_v3 = vld [vmem:[%s4258_s1 + $0x330] sm:$0xff]  ;;  %v3759_v10 = vld [vmem:[#allocation6 + $0x360] sm:$0xff]   ;;  %v517_v11 = vld [vmem:[%s4258_s1 + $0x448] sm:$0xff] }
  0xe9   : > { %3178 = vmatpush3.bf16.msra.mxu1 %v3720_v14  ;;  %3234 = vmatpush3.bf16.msra.mxu0 %v3728_v37  ;;  %v595_v14 = vpack.c.bf16 %v403_v7, %v387_v6  ;;  %v467_v37 = vld [vmem:[%s4258_s1 + $0x2b8] sm:$0xff]  ;;  %v498_v4 = vld [vmem:[%s4258_s1 + $0x3b0] sm:$0xff]  ;;  %v500_v6 = vld [vmem:[%s4258_s1 + $0x3c0] sm:$0xff] }
  0xea   : > { %3179 = vmatprep.subr.bf16.mxu1 %v3724_v26  ;;  %3235 = vmatprep.subr.bf16.mxu0 %v3730_v46  ;;  %v3742_v26 = vld [vmem:[#allocation6 + $0x2b8] sm:$0xff]   ;;  %v629_v46 = vpack.c.bf16 %v469_v39, %v453_v38  ;;  %v3756_v7 = vld [vmem:[#allocation6 + $0x2d0] sm:$0xff]   ;;  %v3768_v38 = vld [vmem:[#allocation6 + $0x280] sm:$0xff]  }
  0xeb   : > { %v3769_v39 = vld [vmem:[#allocation6 + $0x348] sm:$0xff]  }
  0xec   : > { %v473_v23 = vld [vmem:[%s4258_s1 + $0x2e8] sm:$0xff] }
  0xed   : > { %3180 = vmatpush3.bf16.msra.mxu1 %v3726_v32  ;;  %3236 = vmatpush3.bf16.msra.mxu0 %v3732_v50  ;;  %v3744_v32 = vld [vmem:[#allocation6 + $0x2b0] sm:$0xff]   ;;  %v452_v50 = vld [vmem:[%s4258_s1 + $0x240] sm:$0xff] }
  0xee   : > { %3181 = vmatprep.subr.bf16.mxu1 %v3729_v43  ;;  %3237 = vmatprep.subr.bf16.mxu0 %v3733_v54  ;;  %v3750_v43 = vld [vmem:[#allocation6 + $0x338] sm:$0xff]  }
  0xef   : > { %1876 = vmatmul.mubr.bf16.gmra.mxu1 %v638_v27  ;;  %1964 = vmatmul.mubr.bf16.gmra.mxu0 %v640_v28  ;;  %v611_v27 = vpack.c.bf16 %v435_v21, %v419_v20  ;;  %v3743_v28 = vld [vmem:[#allocation6 + $0x2f0] sm:$0xff]   ;;  %v483_v54 = vld [vmem:[%s4258_s1 + $0x338] sm:$0xff]  ;;  %v3763_v21 = vld [vmem:[#allocation6 + $0x288] sm:$0xff]  }
  0xf0   : > { %1883 = vmatprep.mubr.bf16.mxu1 %v655_v30  ;;  %1971 = vmatprep.mubr.bf16.mxu0 %v657_v31  ;;  %v418_v30 = vld [vmem:[%s4258_s1 + $0x130] sm:$0xff]  ;;  %v3762_v20 = vld [vmem:[#allocation6 + $0x358] sm:$0xff]  }
  0xf1   : > { %3182 = vmatpush3.bf16.msra.mxu1 %v3731_v49  ;;  %3238 = vmatpush3.bf16.msra.mxu0 %v3734_v57  ;;  %v434_v31 = vld [vmem:[%s4258_s1 + $0x1b0] sm:$0xff]  ;;  %v485_v57 = vld [vmem:[%s4258_s1 + $0x348] sm:$0xff] }
  0xf2   : > { %3183 = vmatprep.subr.bf16.mxu1 %v3735_v59  ;;  %3239 = vmatprep.subr.bf16.mxu0 %v3737_v63  ;;  %v610_v41 = vpack.c.bf16 %v434_v31, %v418_v30  ;;  %v466_v49 = vld [vmem:[%s4258_s1 + $0x2b0] sm:$0xff]  ;;  %v3751_v59 = vld [vmem:[#allocation6 + $0x2d8] sm:$0xff]   ;;  %v643_v63 = vpack.c.bf16 %v499_v55, %v483_v54  ;;  %v549_v30 = vld [vmem:[%s4258_s1 + $0x548] sm:$0xff] }
  0xf3   : > { %v565_v31 = vld [vmem:[%s4258_s1 + $0x5c8] sm:$0xff]  ;;  %v578_v54 = vld [vmem:[%s4258_s1 + $0x630] sm:$0xff]  ;;  %v580_v55 = vld [vmem:[%s4258_s1 + $0x640] sm:$0xff] }
  0xf5   : > { %3184 = vmatpush3.bf16.msra.mxu1 %v3736_v60  ;;  %3240 = vmatpush3.bf16.msra.mxu0 %v3738_v2  ;;  %v3757_v2 = vld [vmem:[#allocation6 + $0x328] sm:$0xff]  }
  0xf6   : > { %3241 = vmatprep.subr.bf16.mxu0 %v3739_v5  ;;  %3285 = vmatprep.subr.bf16.mxu1 %v3741_v9  ;;  %v484_v5 = vld [vmem:[%s4258_s1 + $0x340] sm:$0xff]  ;;  %v531_v9 = vld [vmem:[%s4258_s1 + $0x4b8] sm:$0xff] }
  0xf7   : > { %1884 = vmatmul.mubr.bf16.gmra.mxu1 %v654_v44  ;;  %1972 = vmatmul.mubr.bf16.gmra.mxu0 %v656_v45  ;;  %v627_v44 = vpack.c.bf16 %v467_v37, %v451_v36  ;;  %v3746_v45 = vld [vmem:[#allocation6 + $0x2a8] sm:$0xff]   ;;  %v644_v16 = vpack.c.bf16 %v500_v6, %v484_v5  ;;  %v677_v37 = vpack.c.bf16 %v565_v31, %v549_v30  ;;  %v439_v5 = vld [vmem:[%s4258_s1 + $0x1d8] sm:$0xff]  ;;  %v454_v30 = vld [vmem:[%s4258_s1 + $0x250] sm:$0xff] }
  0xf8   : > { %1891 = vmatprep.mubr.bf16.mxu1 %v671_v47  ;;  %1979 = vmatprep.mubr.bf16.mxu0 %v673_v48  ;;  %v3747_v47 = vld [vmem:[#allocation6 + $0x2e0] sm:$0xff]   ;;  %v450_v48 = vld [vmem:[%s4258_s1 + $0x230] sm:$0xff]  ;;  %v425_v6 = vld [vmem:[%s4258_s1 + $0x168] sm:$0xff] }
  0xf9   : > { %3242 = vmatpush3.bf16.msra.mxu0 %v3740_v8  ;;  %v626_v60 = vpack.c.bf16 %v466_v49, %v450_v48  ;;  %v515_v8 = vld [vmem:[%s4258_s1 + $0x438] sm:$0xff]  ;;  %v3772_v48 = vld [vmem:[#allocation6 + $0x300] sm:$0xff]   ;;  %v470_v31 = vld [vmem:[%s4258_s1 + $0x2d0] sm:$0xff] }
  0xfa   : > { %3343 = vmatprep.subr.bf16.mxu0 %v3749_v40  ;;  %v659_v18 = vpack.c.bf16 %v531_v9, %v515_v8  ;;  %v546_v40 = vld [vmem:[%s4258_s1 + $0x530] sm:$0xff]  ;;  %v3773_v49 = vld [vmem:[#allocation6 + $0x3f8] sm:$0xff]  }
  0xff   : > { %1892 = vmatmul.mubr.bf16.gmra.mxu1 %v670_v61  ;;  %1980 = vmatmul.mubr.bf16.gmra.mxu0 %v672_v62  ;;  %v628_v61 = vpack.c.bf16 %v468_v51, %v452_v50  ;;  %v3755_v62 = vld [vmem:[#allocation6 + $0x368] sm:$0xff]  }
 0x100   : > { %1899 = vmatprep.mubr.bf16.mxu1 %v687_v0  ;;  %1987 = vmatprep.mubr.bf16.mxu0 %v689_v1  ;;  %v645_v0 = vpack.c.bf16 %v501_v58, %v485_v57  ;;  %v3752_v1 = vld [vmem:[#allocation6 + $0x298] sm:$0xff]   ;;  %v393_v58 = vld [vmem:[%s4258_s1 + $0x68] sm:$0xff] }
 0x101   : > { %v407_v57 = vld [vmem:[%s4258_s1 + $0xd8] sm:$0xff] }
 0x107   : > { %1900 = vmatmul.mubr.bf16.gmra.mxu1 %v686_v12  ;;  %1988 = vmatmul.mubr.bf16.gmra.mxu0 %v688_v13  ;;  %v533_v12 = vld [vmem:[%s4258_s1 + $0x4c8] sm:$0xff]  ;;  %v3758_v13 = vld [vmem:[#allocation6 + $0x290] sm:$0xff]  }
 0x108   : > { %2027 = vmatprep.mubr.bf16.mxu1 %v595_v14  ;;  %2115 = vmatprep.mubr.bf16.mxu0 %v597_v15  ;;  %v3760_v14 = vld [vmem:[#allocation6 + $0x320] sm:$0xff]   ;;  %v642_v15 = vpack.c.bf16 %v498_v4, %v482_v3  ;;  %v661_v19 = vpack.c.bf16 %v533_v12, %v517_v11  ;;  %v423_v4 = vld [vmem:[%s4258_s1 + $0x158] sm:$0xff]  ;;  %v3775_v12 = vld [vmem:[#allocation6 + $0x3f0] sm:$0xff]  }
 0x109   : > { %v408_v3 = vld [vmem:[%s4258_s1 + $0xe0] sm:$0xff]  ;;  %v615_v11 = vpack.c.bf16 %v439_v5, %v423_v4  ;;  %v553_v4 = vld [vmem:[%s4258_s1 + $0x568] sm:$0xff] }
 0x10a   : > { %v569_v5 = vld [vmem:[%s4258_s1 + $0x5e8] sm:$0xff] }
 0x10f   : > { %2028 = vmatmul.mubr.bf16.vlgmr.msra.gmra.mxu1 %v594_v24  ;;  %2116 = vmatmul.mubr.bf16.vlgmr.msra.gmra.mxu0 %v596_v25  ;;  %v516_v24 = vld [vmem:[%s4258_s1 + $0x440] sm:$0xff] }
 0x110   : > { %3286 = vmatpush3.bf16.msra.mxu1 %v3742_v26  ;;  %2035 = vmatprep.mubr.bf16.mxu1 %v611_v27  ;;  %v532_v25 = vld [vmem:[%s4258_s1 + $0x4c0] sm:$0xff]  ;;  %v3764_v26 = vld [vmem:[#allocation6 + $0x318] sm:$0xff]  }
 0x111   : > { %3287 = vmatprep.subr.bf16.mxu1 %v3743_v28  ;;  %2123 = vmatprep.mubr.bf16.mxu0 %v613_v29  ;;  %v547_v27 = vld [vmem:[%s4258_s1 + $0x538] sm:$0xff]  ;;  %v3765_v28 = vld [vmem:[#allocation6 + $0x350] sm:$0xff]  }
 0x112   : > { %3344 = vmatpush3.bf16.msra.mxu0 %v3750_v43  ;;  %v563_v29 = vld [vmem:[%s4258_s1 + $0x5b8] sm:$0xff]  ;;  %v548_v43 = vld [vmem:[%s4258_s1 + $0x540] sm:$0xff] }
 0x113   : > { %3345 = vmatprep.subr.bf16.mxu0 %v3753_v52  ;;  %v675_v36 = vpack.c.bf16 %v563_v29, %v547_v27  ;;  %v3778_v27 = vld [vmem:[#allocation6 + $0x3a8] sm:$0xff]   ;;  %v3779_v29 = vld [vmem:[#allocation6 + $0x3e0] sm:$0xff]  }
 0x114   : > { %3288 = vmatpush3.bf16.msra.mxu1 %v3744_v32  ;;  %v3766_v32 = vld [vmem:[#allocation6 + $0x310] sm:$0xff]  }
 0x115   : > { %3289 = vmatprep.subr.bf16.mxu1 %v3745_v35  ;;  %v660_v35 = vpack.c.bf16 %v532_v25, %v516_v24 }
 0x116   : > { %3346 = vmatpush3.bf16.msra.mxu0 %v3754_v56  ;;  %v391_v56 = vld [vmem:[%s4258_s1 + $0x58] sm:$0xff] }
 0x117   : > { %2036 = vmatmul.mubr.bf16.gmra.mxu1 %v610_v41  ;;  %2124 = vmatmul.mubr.bf16.gmra.mxu0 %v612_v42  ;;  %v3770_v41 = vld [vmem:[#allocation6 + $0x308] sm:$0xff]   ;;  %v562_v42 = vld [vmem:[%s4258_s1 + $0x5b0] sm:$0xff] }
 0x118   : > { %2043 = vmatprep.mubr.bf16.mxu1 %v627_v44  ;;  %3290 = vmatpush3.bf16.msra.mxu1 %v3746_v45  ;;  %v3771_v44 = vld [vmem:[#allocation6 + $0x340] sm:$0xff]   ;;  %v674_v50 = vpack.c.bf16 %v562_v42, %v546_v40  ;;  %v630_v40 = vpack.c.bf16 %v470_v31, %v454_v30  ;;  %v394_v30 = vld [vmem:[%s4258_s1 + $0x70] sm:$0xff] }
 0x119   : > { %2131 = vmatprep.mubr.bf16.mxu0 %v629_v46  ;;  %3291 = vmatprep.subr.bf16.mxu1 %v3747_v47  ;;  %v564_v45 = vld [vmem:[%s4258_s1 + $0x5c0] sm:$0xff]  ;;  %v579_v46 = vld [vmem:[%s4258_s1 + $0x638] sm:$0xff]  ;;  %v581_v47 = vld [vmem:[%s4258_s1 + $0x648] sm:$0xff] }
 0x11a   : > { %3347 = vmatprep.subr.bf16.mxu0 %v3755_v62  ;;  %v676_v51 = vpack.c.bf16 %v564_v45, %v548_v43  ;;  %v691_v52 = vpack.c.bf16 %v579_v46, %v579_v46  ;;  %v599_v62 = vpack.c.bf16 %v407_v57, %v391_v56  ;;  %v3783_v45 = vld [vmem:[#allocation6 + $0x3d0] sm:$0xff]  }
 0x11b   : > { %3348 = vmatpush3.bf16.msra.mxu0 %v3757_v2  ;;  %v392_v2 = vld [vmem:[%s4258_s1 + $0x60] sm:$0xff]  ;;  %v486_v46 = vld [vmem:[%s4258_s1 + $0x350] sm:$0xff] }
 0x11c   : > { %3292 = vmatpush3.bf16.msra.mxu1 %v3748_v53  ;;  %3349 = vmatprep.subr.bf16.mxu0 %v3759_v10  ;;  %v693_v53 = vpack.c.bf16 %v581_v47, %v581_v47  ;;  %v600_v9 = vpack.c.bf16 %v408_v3, %v392_v2  ;;  %v3774_v10 = vld [vmem:[#allocation6 + $0x3b8] sm:$0xff]   ;;  %v502_v47 = vld [vmem:[%s4258_s1 + $0x3d0] sm:$0xff] }
 0x11d   : > { %3293 = vmatprep.subr.bf16.mxu1 %v3751_v59  ;;  %v409_v59 = vld [vmem:[%s4258_s1 + $0xe8] sm:$0xff]  ;;  %v646_v56 = vpack.c.bf16 %v502_v47, %v486_v46  ;;  %v551_v2 = vld [vmem:[%s4258_s1 + $0x558] sm:$0xff]  ;;  %v410_v31 = vld [vmem:[%s4258_s1 + $0xf0] sm:$0xff] }
 0x11e   : > { %v567_v3 = vld [vmem:[%s4258_s1 + $0x5d8] sm:$0xff]  ;;  %v426_v47 = vld [vmem:[%s4258_s1 + $0x170] sm:$0xff] }
 0x11f   : > { %2044 = vmatmul.mubr.bf16.gmra.mxu1 %v626_v60  ;;  %2132 = vmatmul.mubr.bf16.gmra.mxu0 %v628_v61  ;;  %v690_v60 = vpack.c.bf16 %v578_v54, %v578_v54  ;;  %v692_v61 = vpack.c.bf16 %v580_v55, %v580_v55  ;;  %v3784_v54 = vld [vmem:[#allocation6 + $0x390] sm:$0xff]   ;;  %v3785_v55 = vld [vmem:[#allocation6 + $0x3c8] sm:$0xff]  }
 0x120   : > { %2051 = vmatprep.mubr.bf16.mxu1 %v643_v63  ;;  %2139 = vmatprep.mubr.bf16.mxu0 %v645_v0  ;;  %v601_v63 = vpack.c.bf16 %v409_v59, %v393_v58  ;;  %v390_v0 = vld [vmem:[%s4258_s1 + $0x50] sm:$0xff]  ;;  %v3786_v58 = vld [vmem:[#allocation6 + $0x388] sm:$0xff]  }
 0x121   : > { %3294 = vmatpush3.bf16.msra.mxu1 %v3752_v1  ;;  %3350 = vmatpush3.bf16.msra.mxu0 %v3760_v14  ;;  %v406_v1 = vld [vmem:[%s4258_s1 + $0xd0] sm:$0xff] }
 0x122   : > { %3295 = vmatprep.subr.bf16.mxu1 %v3756_v7  ;;  %3351 = vmatprep.subr.bf16.mxu0 %v3762_v20  ;;  %v441_v7 = vld [vmem:[%s4258_s1 + $0x1e8] sm:$0xff]  ;;  %v598_v8 = vpack.c.bf16 %v406_v1, %v390_v0  ;;  %v422_v14 = vld [vmem:[%s4258_s1 + $0x150] sm:$0xff]  ;;  %v455_v20 = vld [vmem:[%s4258_s1 + $0x258] sm:$0xff] }
 0x123   : > { %v520_v0 = vld [vmem:[%s4258_s1 + $0x460] sm:$0xff] }
 0x124   : > { %v536_v1 = vld [vmem:[%s4258_s1 + $0x4e0] sm:$0xff] }
 0x125   : > { %3296 = vmatpush3.bf16.msra.mxu1 %v3758_v13  ;;  %3352 = vmatpush3.bf16.msra.mxu0 %v3764_v26  ;;  %v617_v13 = vpack.c.bf16 %v441_v7, %v425_v6  ;;  %v3788_v6 = vld [vmem:[#allocation6 + $0x380] sm:$0xff]  }
 0x126   : > { %3297 = vmatprep.subr.bf16.mxu1 %v3761_v17  ;;  %3353 = vmatprep.subr.bf16.mxu0 %v3765_v28  ;;  %v424_v17 = vld [vmem:[%s4258_s1 + $0x160] sm:$0xff]  ;;  %v633_v28 = vpack.c.bf16 %v473_v23, %v457_v22  ;;  %v395_v23 = vld [vmem:[%s4258_s1 + $0x78] sm:$0xff] }
 0x127   : > { %2052 = vmatmul.mubr.bf16.gmra.mxu1 %v642_v15  ;;  %2140 = vmatmul.mubr.bf16.gmra.mxu0 %v644_v16  ;;  %v438_v15 = vld [vmem:[%s4258_s1 + $0x1d0] sm:$0xff]  ;;  %v584_v22 = vld [vmem:[%s4258_s1 + $0x660] sm:$0xff] }
 0x128   : > { %2059 = vmatprep.mubr.bf16.mxu1 %v659_v18  ;;  %2147 = vmatprep.mubr.bf16.mxu0 %v661_v19  ;;  %v3776_v16 = vld [vmem:[#allocation6 + $0x3b0] sm:$0xff]   ;;  %v440_v18 = vld [vmem:[%s4258_s1 + $0x1e0] sm:$0xff]  ;;  %v3777_v19 = vld [vmem:[#allocation6 + $0x3e8] sm:$0xff]   ;;  %v614_v24 = vpack.c.bf16 %v438_v15, %v422_v14 }
 0x129   : > { %3298 = vmatpush3.bf16.msra.mxu1 %v3763_v21  ;;  %3354 = vmatpush3.bf16.msra.mxu0 %v3766_v32  ;;  %v471_v21 = vld [vmem:[%s4258_s1 + $0x2d8] sm:$0xff]  ;;  %v616_v25 = vpack.c.bf16 %v440_v18, %v424_v17  ;;  %v456_v32 = vld [vmem:[%s4258_s1 + $0x260] sm:$0xff] }
 0x12a   : > { %3299 = vmatprep.subr.bf16.mxu1 %v3767_v33  ;;  %3355 = vmatprep.subr.bf16.mxu0 %v3769_v39  ;;  %v631_v26 = vpack.c.bf16 %v471_v21, %v455_v20  ;;  %v472_v33 = vld [vmem:[%s4258_s1 + $0x2e0] sm:$0xff]  ;;  %v3781_v39 = vld [vmem:[#allocation6 + $0x3d8] sm:$0xff]   ;;  %v582_v21 = vld [vmem:[%s4258_s1 + $0x650] sm:$0xff] }
 0x12b   : > { %v568_v14 = vld [vmem:[%s4258_s1 + $0x5e0] sm:$0xff]  ;;  %v583_v15 = vld [vmem:[%s4258_s1 + $0x658] sm:$0xff] }
 0x12d   : > { %3300 = vmatpush3.bf16.msra.mxu1 %v3768_v38  ;;  %3356 = vmatpush3.bf16.msra.mxu0 %v3770_v41  ;;  %v505_v38 = vld [vmem:[%s4258_s1 + $0x3e8] sm:$0xff]  ;;  %v632_v41 = vpack.c.bf16 %v472_v33, %v456_v32 }
 0x12e   : > { %3357 = vmatprep.subr.bf16.mxu0 %v3771_v44  ;;  %3401 = vmatprep.subr.bf16.mxu1 %v3773_v49  ;;  %v3782_v44 = vld [vmem:[#allocation6 + $0x398] sm:$0xff]   ;;  %v504_v49 = vld [vmem:[%s4258_s1 + $0x3e0] sm:$0xff] }
 0x12f   : > { %2060 = vmatmul.mubr.bf16.gmra.mxu1 %v658_v34  ;;  %2148 = vmatmul.mubr.bf16.gmra.mxu0 %v660_v35  ;;  %v3780_v34 = vld [vmem:[#allocation6 + $0x3a0] sm:$0xff]   ;;  %v487_v35 = vld [vmem:[%s4258_s1 + $0x358] sm:$0xff] }
 0x130   : > { %2067 = vmatprep.mubr.bf16.mxu1 %v675_v36  ;;  %2155 = vmatprep.mubr.bf16.mxu0 %v677_v37  ;;  %v503_v36 = vld [vmem:[%s4258_s1 + $0x3d8] sm:$0xff]  ;;  %v489_v37 = vld [vmem:[%s4258_s1 + $0x368] sm:$0xff] }
 0x131   : > { %3358 = vmatpush3.bf16.msra.mxu0 %v3772_v48  ;;  %v647_v42 = vpack.c.bf16 %v503_v36, %v487_v35  ;;  %v649_v43 = vpack.c.bf16 %v505_v38, %v489_v37  ;;  %v488_v48 = vld [vmem:[%s4258_s1 + $0x360] sm:$0xff]  ;;  %v443_v35 = vld [vmem:[%s4258_s1 + $0x1f8] sm:$0xff] }
 0x132   : > { %v648_v57 = vpack.c.bf16 %v504_v49, %v488_v48  ;;  %v442_v48 = vld [vmem:[%s4258_s1 + $0x1f0] sm:$0xff] }
 0x137   : > { %2068 = vmatmul.mubr.bf16.gmra.mxu1 %v674_v50  ;;  %2156 = vmatmul.mubr.bf16.gmra.mxu0 %v676_v51  ;;  %v519_v50 = vld [vmem:[%s4258_s1 + $0x458] sm:$0xff] }
 0x138   : > { %2075 = vmatprep.mubr.bf16.mxu1 %v691_v52  ;;  %2163 = vmatprep.mubr.bf16.mxu0 %v693_v53  ;;  %v535_v51 = vld [vmem:[%s4258_s1 + $0x4d8] sm:$0xff]  ;;  %v521_v52 = vld [vmem:[%s4258_s1 + $0x468] sm:$0xff] }
 0x139   : > { %v537_v53 = vld [vmem:[%s4258_s1 + $0x4e8] sm:$0xff]  ;;  %v663_v59 = vpack.c.bf16 %v535_v51, %v519_v50  ;;  %v459_v51 = vld [vmem:[%s4258_s1 + $0x278] sm:$0xff] }
 0x13f   : > { %2076 = vmatmul.mubr.bf16.gmra.mxu1 %v690_v60  ;;  %2164 = vmatmul.mubr.bf16.gmra.mxu0 %v692_v61  ;;  %v665_v60 = vpack.c.bf16 %v537_v53, %v521_v52  ;;  %v3787_v61 = vld [vmem:[#allocation6 + $0x3c0] sm:$0xff]   ;;  %v475_v52 = vld [vmem:[%s4258_s1 + $0x2f8] sm:$0xff] }
 0x140   : > { %2203 = vmatprep.mubr.bf16.mxu1 %v599_v62  ;;  %2291 = vmatprep.mubr.bf16.mxu0 %v601_v63  ;;  %v518_v62 = vld [vmem:[%s4258_s1 + $0x450] sm:$0xff] }
 0x141   : > { %v534_v63 = vld [vmem:[%s4258_s1 + $0x4d0] sm:$0xff] }
 0x142   : > { %v662_v7 = vpack.c.bf16 %v534_v63, %v518_v62 }
 0x147   : > { %2204 = vmatmul.mubr.bf16.vlgmr.msra.gmra.mxu1 %v598_v8  ;;  %2292 = vmatmul.mubr.bf16.vlgmr.msra.gmra.mxu0 %v600_v9  ;;  %v664_v8 = vpack.c.bf16 %v536_v1, %v520_v0  ;;  %v679_v9 = vpack.c.bf16 %v567_v3, %v551_v2  ;;  %v458_v0 = vld [vmem:[%s4258_s1 + $0x270] sm:$0xff] }
 0x148   : > { %3402 = vmatpush3.bf16.msra.mxu1 %v3774_v10  ;;  %2211 = vmatprep.mubr.bf16.mxu1 %v615_v11  ;;  %v681_v10 = vpack.c.bf16 %v569_v5, %v553_v4  ;;  %v550_v11 = vld [vmem:[%s4258_s1 + $0x550] sm:$0xff]  ;;  %v491_v4 = vld [vmem:[%s4258_s1 + $0x378] sm:$0xff] }
 0x149   : > { %3403 = vmatprep.subr.bf16.mxu1 %v3775_v12  ;;  %2299 = vmatprep.mubr.bf16.mxu0 %v617_v13  ;;  %v566_v12 = vld [vmem:[%s4258_s1 + $0x5d0] sm:$0xff]  ;;  %v552_v13 = vld [vmem:[%s4258_s1 + $0x560] sm:$0xff]  ;;  %v507_v5 = vld [vmem:[%s4258_s1 + $0x3f8] sm:$0xff] }
 0x14a   : > { %v678_v17 = vpack.c.bf16 %v566_v12, %v550_v11  ;;  %v680_v18 = vpack.c.bf16 %v568_v14, %v552_v13  ;;  %v474_v1 = vld [vmem:[%s4258_s1 + $0x2f0] sm:$0xff]  ;;  %v651_v11 = vpack.c.bf16 %v507_v5, %v491_v4  ;;  %v587_v4 = vld [vmem:[%s4258_s1 + $0x678] sm:$0xff] }
 0x14c   : > { %3404 = vmatpush3.bf16.msra.mxu1 %v3776_v16  ;;  %v585_v16 = vld [vmem:[%s4258_s1 + $0x668] sm:$0xff] }
 0x14d   : > { %3405 = vmatprep.subr.bf16.mxu1 %v3777_v19  ;;  %v695_v19 = vpack.c.bf16 %v583_v15, %v583_v15  ;;  %v697_v20 = vpack.c.bf16 %v585_v16, %v585_v16  ;;  %v490_v15 = vld [vmem:[%s4258_s1 + $0x370] sm:$0xff] }
 0x14e   : > { %v506_v16 = vld [vmem:[%s4258_s1 + $0x3f0] sm:$0xff] }
 0x14f   : > { %2212 = vmatmul.mubr.bf16.gmra.mxu1 %v614_v24  ;;  %2300 = vmatmul.mubr.bf16.gmra.mxu0 %v616_v25  ;;  %v411_v24 = vld [vmem:[%s4258_s1 + $0xf8] sm:$0xff]  ;;  %v694_v25 = vpack.c.bf16 %v582_v21, %v582_v21 }
 0x150   : > { %2219 = vmatprep.mubr.bf16.mxu1 %v631_v26  ;;  %3406 = vmatpush3.bf16.msra.mxu1 %v3778_v27  ;;  %v696_v26 = vpack.c.bf16 %v584_v22, %v584_v22  ;;  %v603_v27 = vpack.c.bf16 %v411_v24, %v395_v23  ;;  %v650_v22 = vpack.c.bf16 %v506_v16, %v490_v15 }
 0x151   : > { %2307 = vmatprep.mubr.bf16.mxu0 %v633_v28  ;;  %3407 = vmatprep.subr.bf16.mxu1 %v3779_v29 }
 0x154   : > { %3408 = vmatpush3.bf16.msra.mxu1 %v3780_v34  ;;  %v427_v34 = vld [vmem:[%s4258_s1 + $0x178] sm:$0xff] }
 0x155   : > { %3409 = vmatprep.subr.bf16.mxu1 %v3781_v39 }
 0x157   : > { %2220 = vmatmul.mubr.bf16.gmra.mxu1 %v630_v40  ;;  %2308 = vmatmul.mubr.bf16.gmra.mxu0 %v632_v41  ;;  %v602_v40 = vpack.c.bf16 %v410_v31, %v394_v30  ;;  %v619_v41 = vpack.c.bf16 %v443_v35, %v427_v34  ;;  %v522_v30 = vld [vmem:[%s4258_s1 + $0x470] sm:$0xff]  ;;  %v555_v34 = vld [vmem:[%s4258_s1 + $0x578] sm:$0xff] }
 0x158   : > { %2227 = vmatprep.mubr.bf16.mxu1 %v647_v42  ;;  %2315 = vmatprep.mubr.bf16.mxu0 %v649_v43  ;;  %v538_v31 = vld [vmem:[%s4258_s1 + $0x4f0] sm:$0xff]  ;;  %v571_v35 = vld [vmem:[%s4258_s1 + $0x5f8] sm:$0xff] }
 0x159   : > { %3410 = vmatpush3.bf16.msra.mxu1 %v3782_v44 }
 0x15a   : > { %3411 = vmatprep.subr.bf16.mxu1 %v3783_v45 }
 0x15d   : > { %3412 = vmatpush3.bf16.msra.mxu1 %v3784_v54 }
 0x15e   : > { %3413 = vmatprep.subr.bf16.mxu1 %v3785_v55 }
 0x15f   : > { %2228 = vmatmul.mubr.bf16.gmra.mxu1 %v646_v56  ;;  %2316 = vmatmul.mubr.bf16.gmra.mxu0 %v648_v57  ;;  %v618_v57 = vpack.c.bf16 %v442_v48, %v426_v47  ;;  %v666_v47 = vpack.c.bf16 %v538_v31, %v522_v30  ;;  %v3791_v30 = vld [vmem:[#allocation9 + $0x28] sm:$0xff]  }
 0x160   : > { %2235 = vmatprep.mubr.bf16.mxu1 %v663_v59  ;;  %2323 = vmatprep.mubr.bf16.mxu0 %v665_v60 }
 0x161   : > { %3414 = vmatpush3.bf16.msra.mxu1 %v3786_v58  ;;  %v635_v58 = vpack.c.bf16 %v475_v52, %v459_v51 }
 0x162   : > { %3415 = vmatprep.subr.bf16.mxu1 %v3787_v61 }
 0x165   : > { %3416 = vmatpush3.bf16.msra.mxu1 %v3788_v6 }
 0x167   : > { %2236 = vmatmul.mubr.bf16.gmra.mxu1 %v662_v7  ;;  %2324 = vmatmul.mubr.bf16.gmra.mxu0 %v664_v8 }
 0x168   : > { %2243 = vmatprep.mubr.bf16.mxu1 %v679_v9  ;;  %2331 = vmatprep.mubr.bf16.mxu0 %v681_v10  ;;  %v634_v10 = vpack.c.bf16 %v474_v1, %v458_v0  ;;  %v570_v0 = vld [vmem:[%s4258_s1 + $0x5f0] sm:$0xff] }
 0x169   : > { %v3790_v1 = vld [vmem:[#allocation9 + $0x30] sm:$0xff]  }
 0x16f   : > { %2244 = vmatmul.mubr.bf16.gmra.mxu1 %v678_v17  ;;  %2332 = vmatmul.mubr.bf16.gmra.mxu0 %v680_v18  ;;  %v523_v18 = vld [vmem:[%s4258_s1 + $0x478] sm:$0xff] }
 0x170   : > { %2251 = vmatprep.mubr.bf16.mxu1 %v695_v19  ;;  %2339 = vmatprep.mubr.bf16.mxu0 %v697_v20  ;;  %v539_v19 = vld [vmem:[%s4258_s1 + $0x4f8] sm:$0xff] }
 0x171   : > { %v667_v23 = vpack.c.bf16 %v539_v19, %v523_v18 }
 0x177   : > { %v3035_v28 = vpop.f32.mrf.mxu1  ;;  %2252 = vmatmul.mubr.bf16.gmra.mxu1 %v694_v25  ;;  %v3011_v29 = vpop.f32.mrf.mxu0  ;;  %2340 = vmatmul.mubr.bf16.gmra.mxu0 %v696_v26  ;;  %v4504_v25 = vld [vmem:[#allocation8] ss:$0 sm:$0xff] }
 0x178   : > { %2379 = vmatprep.mubr.bf16.mxu1 %v603_v27 }
 0x179   : > { %v3036_v32 = vpop.f32.mrf.mxu1  ;;  %v3012_v33 = vpop.f32.mrf.mxu0 }
 0x17a   : > { %v4464_v36 = vadd.f32 %v3036_v32, %v3035_v28  ;;  %v3013_v37 = vadd.f32 %v3012_v33, %v3011_v29 }
 0x17b   : > { %v3038_v38 = vpop.f32.mrf.mxu1  ;;  %v3014_v39 = vpop.f32.mrf.mxu0 }
 0x17c   : > { %v1766_v28 = vadd.f32 %v3013_v37, %v4504_v25 }
 0x17d   : > { %v3039_v42 = vpop.f32.mrf.mxu1  ;;  %v3015_v43 = vpop.f32.mrf.mxu0 }
 0x17e   : > { %v4466_v44 = vadd.f32 %v3039_v42, %v3038_v38  ;;  %v3016_v29 = vadd.f32 %v3015_v43, %v3014_v39  ;;  %v4833_v38 = vmov 0.0   ;;  %v3789_v42 = vld [vmem:[#allocation9 + $0x38] sm:$0xff]   ;;  %v683_v43 = vpack.c.bf16 %v571_v35, %v555_v34 }
 0x17f   : > { %2380 = vmatmul.mubr.bf16.vlgmr.msra.gmra.mxu1 %v602_v40  ;;  %v3017_v45 = vpop.f32.mrf.mxu0  ;;  %v3041_v46 = vpop.f32.mrf.mxu1  ;;  %3482 = vmatprep.subr.bf16.mxu0 %v4833_v38 }
 0x180   : > { %2387 = vmatprep.mubr.bf16.mxu1 %v619_v41  ;;  %3526 = vmatprep.subr.bf16.mxu1 %v4833_v38  ;;  %v1769_v37 = vadd.f32 %v3016_v29, %v4504_v25  ;;  %v586_v29 = vld [vmem:[%s4258_s1 + $0x670] sm:$0xff] }
 0x181   : > { %v3018_v49 = vpop.f32.mrf.mxu0  ;;  %v3042_v50 = vpop.f32.mrf.mxu1  ;;  %3483 = vmatpush3.bf16.msra.mxu0 %v3789_v42  ;;  %v698_v42 = vpack.c.bf16 %v586_v29, %v586_v29  ;;  %3498 = vmatprep.mubr.msk.bf16.mxu0 %vm4046_vm0, %v4833_v38 }
 0x182   : > { %v4472_v53 = vadd.f32 %v3018_v49, %v3017_v45  ;;  %v4474_v54 = vadd.f32 %v3042_v50, %v3041_v46  ;;  %3484 = vmatprep.subr.bf16.mxu0 %v4833_v38 }
 0x183   : > { %v4476_v55 = vpop.f32.mrf.mxu0  ;;  %v3044_v56 = vpop.f32.mrf.mxu1 }
 0x185   : > { %v4478_v59 = vpop.f32.mrf.mxu0  ;;  %v3045_v60 = vpop.f32.mrf.mxu1  ;;  %3485 = vmatpush3.bf16.msra.mxu0 %v3790_v1 }
 0x186   : > { %v4480_v61 = vadd.f32 %v3045_v60, %v3044_v56  ;;  %v3022_v60 = vadd.f32 %v4478_v59, %v4476_v55  ;;  %3486 = vmatprep.subr.bf16.mxu0 %v4833_v38  ;;  %v699_v59 = vpack.c.bf16 %v587_v4, %v587_v4 }
 0x187   : > { %2388 = vmatmul.mubr.bf16.gmra.mxu1 %v618_v57  ;;  %v3023_v62 = vpop.f32.mrf.mxu0  ;;  %v3047_v63 = vpop.f32.mrf.mxu1 }
 0x188   : > { %2395 = vmatprep.mubr.bf16.mxu1 %v635_v58  ;;  %v1774_v58 = vadd.f32 %v4472_v53, %v4504_v25  ;;  %v1777_v53 = vadd.f32 %v3022_v60, %v4504_v25 }
 0x189   : > { %v3024_v2 = vpop.f32.mrf.mxu0  ;;  %v3048_v3 = vpop.f32.mrf.mxu1  ;;  %3487 = vmatpush3.bf16.msra.mxu0 %v3791_v30 }
 0x18a   : > { %v4486_v6 = vadd.f32 %v3024_v2, %v3023_v62  ;;  %v4488_v7 = vadd.f32 %v3048_v3, %v3047_v63  ;;  %v554_v63 = vld [vmem:[%s4258_s1 + $0x570] sm:$0xff]  ;;  %3488 = vmatprep.subr.bf16.mxu0 %v4833_v38 }
 0x18b   : > { %v4490_v8 = vpop.f32.mrf.mxu0  ;;  %v3050_v9 = vpop.f32.mrf.mxu1 }
 0x18d   : > { %v4492_v12 = vpop.f32.mrf.mxu0  ;;  %v3051_v13 = vpop.f32.mrf.mxu1 }
 0x18f   : > { %2396 = vmatmul.mubr.bf16.gmra.mxu1 %v634_v10  ;;  %v3029_v14 = vpop.f32.mrf.mxu0 }
 0x190   : > { %2403 = vmatprep.mubr.bf16.mxu1 %v651_v11 }
 0x191   : > { %v3030_v17 = vpop.f32.mrf.mxu0 }
 0x192   : > { %v4498_v20 = vadd.f32 %v3030_v17, %v3029_v14  ;;  %v682_v14 = vpack.c.bf16 %v570_v0, %v554_v63 }
 0x193   : > { %v4500_v21 = vpop.f32.mrf.mxu0 }
 0x195   : > { %v4502_v24 = vpop.f32.mrf.mxu0 }
 0x197   : > { %v3069_v26 = vpop.f32.mrf.mxu1  ;;  %2404 = vmatmul.mubr.bf16.gmra.mxu1 %v650_v22  ;;  %v3127_v27 = vpop.f32.mrf.mxu0 }
 0x198   : > { %2411 = vmatprep.mubr.bf16.mxu1 %v667_v23 }
 0x199   : > { %v3070_v32 = vpop.f32.mrf.mxu1  ;;  %v3128_v33 = vpop.f32.mrf.mxu0 }
 0x19a   : > { %v3071_v40 = vadd.f32 %v3070_v32, %v3069_v26  ;;  %v3129_v41 = vadd.f32 %v3128_v33, %v3127_v27  ;;  %v1782_v26 = vadd.f32 %v4486_v6, %v4504_v25  ;;  %v3028_v27 = vadd.f32 %v4492_v12, %v4490_v8 }
 0x19b   : > { %v3072_v45 = vpop.f32.mrf.mxu1  ;;  %v3130_v46 = vpop.f32.mrf.mxu0 }
 0x19c   : > { %v1854_v39 = vadd.f32 %v3071_v40, %v1766_v28  ;;  %v1785_v6 = vadd.f32 %v3028_v27, %v4504_v25 }
 0x19d   : > { %v3073_v48 = vpop.f32.mrf.mxu1  ;;  %v3131_v49 = vpop.f32.mrf.mxu0 }
 0x19e   : > { %v4515_v50 = vadd.f32 %v3129_v41, %v1854_v39  ;;  %v3074_v51 = vadd.f32 %v3073_v48, %v3072_v45  ;;  %v3132_v52 = vadd.f32 %v3131_v49, %v3130_v46  ;;  %v3792_v39 = vld [vmem:[#allocation9 + $0x20] sm:$0xff]   ;;  %v1790_v49 = vadd.f32 %v4498_v20, %v4504_v25 }
 0x19f   : > { %v3075_v56 = vpop.f32.mrf.mxu1  ;;  %2412 = vmatmul.mubr.bf16.gmra.mxu1 %v666_v47  ;;  %v3133_v57 = vpop.f32.mrf.mxu0  ;;  %3489 = vmatpush3.bf16.msra.mxu0 %v3792_v39  ;;  %v3795_v39 = vld [vmem:[#allocation9 + $0x8] sm:$0xff]  }
 0x1a0   : > { %v1857_v62 = vadd.f32 %v3074_v51, %v1769_v37  ;;  %2419 = vmatprep.mubr.bf16.mxu1 %v683_v43  ;;  %v3034_v51 = vadd.f32 %v4502_v24, %v4500_v21  ;;  %3490 = vmatprep.subr.bf16.mxu0 %v4833_v38 }
 0x1a1   : > { %v3076_v2 = vpop.f32.mrf.mxu1  ;;  %v3134_v3 = vpop.f32.mrf.mxu0 }
 0x1a2   : > { %v4524_v5 = vadd.f32 %v3132_v52, %v1857_v62  ;;  %v3077_v9 = vadd.f32 %v3076_v2, %v3075_v56  ;;  %v3135_v10 = vadd.f32 %v3134_v3, %v3133_v57  ;;  %v1793_v1 = vadd.f32 %v3034_v51, %v4504_v25 }
 0x1a3   : > { %v3078_v11 = vpop.f32.mrf.mxu1  ;;  %v3136_v13 = vpop.f32.mrf.mxu0 }
 0x1a4   : > { %v1862_v55 = vadd.f32 %v3077_v9, %v1774_v58  ;;  %v3793_v9 = vld [vmem:[#allocation9 + $0x18] sm:$0xff]  }
 0x1a5   : > { %v3079_v15 = vpop.f32.mrf.mxu1  ;;  %v3137_v16 = vpop.f32.mrf.mxu0  ;;  %3491 = vmatpush3.bf16.msra.mxu0 %v3793_v9 }
 0x1a6   : > { %v4528_v17 = vadd.f32 %v3135_v10, %v1862_v55  ;;  %v3080_v18 = vadd.f32 %v3079_v15, %v3078_v11  ;;  %v3138_v19 = vadd.f32 %v3137_v16, %v3136_v13  ;;  %3492 = vmatprep.subr.bf16.mxu0 %v4833_v38  ;;  %v1798_v55 = vadd.f32 %v4464_v36, %v4504_v25 }
 0x1a7   : > { %v3081_v22 = vpop.f32.mrf.mxu1  ;;  %2420 = vmatmul.mubr.bf16.gmra.mxu1 %v682_v14  ;;  %v3139_v23 = vpop.f32.mrf.mxu0 }
 0x1a8   : > { %v1865_v28 = vadd.f32 %v3080_v18, %v1777_v53  ;;  %2427 = vmatprep.mubr.bf16.mxu1 %v699_v59 }
 0x1a9   : > { %v3082_v31 = vpop.f32.mrf.mxu1  ;;  %v3140_v32 = vpop.f32.mrf.mxu0 }
 0x1aa   : > { %v4535_v33 = vadd.f32 %v3138_v19, %v1865_v28  ;;  %v3083_v34 = vadd.f32 %v3082_v31, %v3081_v22  ;;  %v3141_v35 = vadd.f32 %v3140_v32, %v3139_v23  ;;  %v3794_v23 = vld [vmem:[#allocation9 + $0x10] sm:$0xff]   ;;  %v1801_v28 = vadd.f32 %v4466_v44, %v4504_v25 }
 0x1ab   : > { %v3084_v40 = vpop.f32.mrf.mxu1  ;;  %v3142_v41 = vpop.f32.mrf.mxu0  ;;  %3493 = vmatpush3.bf16.msra.mxu0 %v3794_v23 }
 0x1ac   : > { %v1870_v45 = vadd.f32 %v3083_v34, %v1782_v26  ;;  %3494 = vmatprep.subr.bf16.mxu0 %v4833_v38 }
 0x1ad   : > { %v3085_v8 = vpop.f32.mrf.mxu1  ;;  %v3143_v12 = vpop.f32.mrf.mxu0 }
 0x1ae   : > { %v4539_v46 = vadd.f32 %v3141_v35, %v1870_v45  ;;  %v3086_v47 = vadd.f32 %v3085_v8, %v3084_v40  ;;  %v3144_v37 = vadd.f32 %v3143_v12, %v3142_v41  ;;  %v1806_v41 = vadd.f32 %v4474_v54, %v4504_v25 }
 0x1af   : > { %v3087_v43 = vpop.f32.mrf.mxu1  ;;  %2428 = vmatmul.mubr.bf16.gmra.mxu1 %v698_v42  ;;  %v3145_v48 = vpop.f32.mrf.mxu0  ;;  %3495 = vmatpush3.bf16.msra.mxu0 %v3795_v39 }
 0x1b0   : > { %v1873_v52 = vadd.f32 %v3086_v47, %v1785_v6  ;;  %3496 = vmatprep.subr.bf16.mxu0 %v4833_v38  ;;  %3540 = vmatprep.mubr.msk.bf16.mxu1 %vm4046_vm0, %v4833_v38 }
 0x1b1   : > { %v3088_v56 = vpop.f32.mrf.mxu1  ;;  %v3146_v57 = vpop.f32.mrf.mxu0 }
 0x1b2   : > { %v4546_v58 = vadd.f32 %v3144_v37, %v1873_v52  ;;  %v3089_v60 = vadd.f32 %v3088_v56, %v3087_v43  ;;  %v3147_v62 = vadd.f32 %v3146_v57, %v3145_v48  ;;  %v1809_v43 = vadd.f32 %v4480_v61, %v4504_v25 }
 0x1b3   : > { %v3090_v63 = vpop.f32.mrf.mxu1  ;;  %v3148_v0 = vpop.f32.mrf.mxu0 }
 0x1b4   : > { %v1878_v2 = vadd.f32 %v3089_v60, %v1790_v49 }
 0x1b5   : > { %v3091_v3 = vpop.f32.mrf.mxu1  ;;  %v3149_v20 = vpop.f32.mrf.mxu0 }
 0x1b6   : > { %v4549_v4 = vadd.f32 %v3147_v62, %v1878_v2  ;;  %v3092_v21 = vadd.f32 %v3091_v3, %v3090_v63  ;;  %v3150_v24 = vadd.f32 %v3149_v20, %v3148_v0  ;;  %v3796_v62 = vld [vmem:[#allocation9] sm:$0xff]   ;;  %v1814_v63 = vadd.f32 %v4488_v7, %v4504_v25 }
 0x1b7   : > { %v3093_v10 = vpop.f32.mrf.mxu1  ;;  %v3151_v11 = vpop.f32.mrf.mxu0  ;;  %3497 = vmatpush3.bf16.msra.mxu0 %v3796_v62 }
 0x1b8   : > { %v1881_v13 = vadd.f32 %v3092_v21, %v1793_v1 }
 0x1b9   : > { %v3094_v14 = vpop.f32.mrf.mxu1  ;;  %v3152_v53 = vpop.f32.mrf.mxu0 }
 0x1ba   : > { %v4554_v59 = vadd.f32 %v3150_v24, %v1881_v13  ;;  %v3095_v15 = vadd.f32 %v3094_v14, %v3093_v10  ;;  %v3153_v16 = vadd.f32 %v3152_v53, %v3151_v11 }
 0x1bb   : > { %v3096_v18 = vpop.f32.mrf.mxu1  ;;  %v3154_v19 = vpop.f32.mrf.mxu0 }
 0x1bc   : > { %v1886_v22 = vadd.f32 %v3095_v15, %v1798_v55 }
 0x1bd   : > { %v3097_v26 = vpop.f32.mrf.mxu1  ;;  %v3155_v27 = vpop.f32.mrf.mxu0 }
 0x1be   : > { %v4558_v29 = vadd.f32 %v3153_v16, %v1886_v22  ;;  %v3098_v30 = vadd.f32 %v3097_v26, %v3096_v18  ;;  %v3156_v31 = vadd.f32 %v3155_v27, %v3154_v19 }
 0x1bf   : > { %v3099_v32 = vpop.f32.mrf.mxu1  ;;  %v3157_v36 = vpop.f32.mrf.mxu0 }
 0x1c0   : > { %v1889_v34 = vadd.f32 %v3098_v30, %v1801_v28 }
 0x1c1   : > { %v3100_v35 = vpop.f32.mrf.mxu1  ;;  %v3158_v40 = vpop.f32.mrf.mxu0 }
 0x1c2   : > { %v4563_v42 = vadd.f32 %v3156_v31, %v1889_v34  ;;  %v3101_v6 = vadd.f32 %v3100_v35, %v3099_v32  ;;  %v3159_v45 = vadd.f32 %v3158_v40, %v3157_v36 }
 0x1c3   : > { %v3102_v44 = vpop.f32.mrf.mxu1  ;;  %v3160_v8 = vpop.f32.mrf.mxu0 }
 0x1c4   : > { %v1894_v12 = vadd.f32 %v3101_v6, %v1806_v41 }
 0x1c5   : > { %v3103_v47 = vpop.f32.mrf.mxu1  ;;  %v3161_v37 = vpop.f32.mrf.mxu0 }
 0x1c6   : > { %v4567_v48 = vadd.f32 %v3159_v45, %v1894_v12  ;;  %v3104_v49 = vadd.f32 %v3103_v47, %v3102_v44  ;;  %v3162_v51 = vadd.f32 %v3161_v37, %v3160_v8 }
 0x1c7   : > { %v3105_v52 = vpop.f32.mrf.mxu1  ;;  %v3163_v56 = vpop.f32.mrf.mxu0 }
 0x1c8   : > { %v1897_v54 = vadd.f32 %v3104_v49, %v1809_v43 }
 0x1c9   : > { %v3106_v57 = vpop.f32.mrf.mxu1  ;;  %v3164_v60 = vpop.f32.mrf.mxu0 }
 0x1ca   : > { %v4572_v0 = vadd.f32 %v3162_v51, %v1897_v54  ;;  %v3107_v1 = vadd.f32 %v3106_v57, %v3105_v52  ;;  %v3165_v61 = vadd.f32 %v3164_v60, %v3163_v56 }
 0x1cb   : > { %v3108_v2 = vpop.f32.mrf.mxu1  ;;  %v3166_v3 = vpop.f32.mrf.mxu0 }
 0x1cc   : > { %v1902_v20 = vadd.f32 %v3107_v1, %v1814_v63 }
 0x1cd   : > { %v3109_v21 = vpop.f32.mrf.mxu1  ;;  %v3167_v24 = vpop.f32.mrf.mxu0 }
 0x1ce   : > { %v4578_v9 = vadd.f32 %v3165_v61, %v1902_v20 }
 0x1cf   : > { %v3185_v7 = vpop.f32.mrf.mxu1  ;;  %v3243_v25 = vpop.f32.mrf.mxu0 }
 0x1d1   : > { %v3186_v10 = vpop.f32.mrf.mxu1  ;;  %v3244_v11 = vpop.f32.mrf.mxu0 }
 0x1d2   : > { %v3187_v13 = vadd.f32 %v3186_v10, %v3185_v7  ;;  %v3245_v14 = vadd.f32 %v3244_v11, %v3243_v25 }
 0x1d3   : > { %v3188_v53 = vpop.f32.mrf.mxu1  ;;  %v3246_v55 = vpop.f32.mrf.mxu0 }
 0x1d4   : > { %v2030_v15 = vadd.f32 %v3187_v13, %v4515_v50 }
 0x1d5   : > { %v3189_v16 = vpop.f32.mrf.mxu1  ;;  %v3247_v18 = vpop.f32.mrf.mxu0 }
 0x1d6   : > { %v4581_v19 = vadd.f32 %v3245_v14, %v2030_v15  ;;  %v3190_v22 = vadd.f32 %v3189_v16, %v3188_v53  ;;  %v3248_v23 = vadd.f32 %v3247_v18, %v3246_v55 }
 0x1d7   : > { %v3191_v26 = vpop.f32.mrf.mxu1  ;;  %v3249_v27 = vpop.f32.mrf.mxu0 }
 0x1d8   : > { %v2033_v28 = vadd.f32 %v3190_v22, %v4524_v5 }
 0x1d9   : > { %v3192_v30 = vpop.f32.mrf.mxu1  ;;  %v3250_v31 = vpop.f32.mrf.mxu0 }
 0x1da   : > { %v4584_v32 = vadd.f32 %v3248_v23, %v2033_v28  ;;  %v3193_v36 = vadd.f32 %v3192_v30, %v3191_v26  ;;  %v3251_v34 = vadd.f32 %v3250_v31, %v3249_v27 }
 0x1db   : > { %v3194_v35 = vpop.f32.mrf.mxu1  ;;  %v3252_v40 = vpop.f32.mrf.mxu0 }
 0x1dc   : > { %v2038_v50 = vadd.f32 %v3193_v36, %v4528_v17 }
 0x1dd   : > { %v3195_v41 = vpop.f32.mrf.mxu1  ;;  %v3253_v6 = vpop.f32.mrf.mxu0 }
 0x1de   : > { %v4587_v45 = vadd.f32 %v3251_v34, %v2038_v50  ;;  %v3196_v44 = vadd.f32 %v3195_v41, %v3194_v35  ;;  %v3254_v8 = vadd.f32 %v3253_v6, %v3252_v40 }
 0x1df   : > { %v3197_v12 = vpop.f32.mrf.mxu1  ;;  %v3255_v47 = vpop.f32.mrf.mxu0 }
 0x1e0   : > { %v2041_v5 = vadd.f32 %v3196_v44, %v4535_v33 }
 0x1e1   : > { %v3198_v37 = vpop.f32.mrf.mxu1  ;;  %v3256_v39 = vpop.f32.mrf.mxu0 }
 0x1e2   : > { %v4590_v43 = vadd.f32 %v3254_v8, %v2041_v5  ;;  %v3199_v49 = vadd.f32 %v3198_v37, %v3197_v12  ;;  %v3257_v51 = vadd.f32 %v3256_v39, %v3255_v47 }
 0x1e3   : > { %v3200_v52 = vpop.f32.mrf.mxu1  ;;  %v3258_v56 = vpop.f32.mrf.mxu0 }
 0x1e4   : > { %v2046_v17 = vadd.f32 %v3199_v49, %v4539_v46 }
 0x1e5   : > { %v3201_v54 = vpop.f32.mrf.mxu1  ;;  %v3259_v57 = vpop.f32.mrf.mxu0 }
 0x1e6   : > { %v4593_v60 = vadd.f32 %v3257_v51, %v2046_v17  ;;  %v3202_v62 = vadd.f32 %v3201_v54, %v3200_v52  ;;  %v3260_v63 = vadd.f32 %v3259_v57, %v3258_v56 }
 0x1e7   : > { %v3203_v1 = vpop.f32.mrf.mxu1  ;;  %v3261_v61 = vpop.f32.mrf.mxu0 }
 0x1e8   : > { %v2049_v33 = vadd.f32 %v3202_v62, %v4546_v58 }
 0x1e9   : > { %v3204_v2 = vpop.f32.mrf.mxu1  ;;  %v3262_v3 = vpop.f32.mrf.mxu0 }
 0x1ea   : > { %v4596_v20 = vadd.f32 %v3260_v63, %v2049_v33  ;;  %v3205_v21 = vadd.f32 %v3204_v2, %v3203_v1  ;;  %v3263_v24 = vadd.f32 %v3262_v3, %v3261_v61 }
 0x1eb   : > { %v3206_v7 = vpop.f32.mrf.mxu1  ;;  %v3264_v25 = vpop.f32.mrf.mxu0 }
 0x1ec   : > { %v2054_v46 = vadd.f32 %v3205_v21, %v4549_v4 }
 0x1ed   : > { %v3207_v10 = vpop.f32.mrf.mxu1  ;;  %v3265_v11 = vpop.f32.mrf.mxu0 }
 0x1ee   : > { %v4599_v13 = vadd.f32 %v3263_v24, %v2054_v46  ;;  %v3208_v14 = vadd.f32 %v3207_v10, %v3206_v7  ;;  %v3266_v53 = vadd.f32 %v3265_v11, %v3264_v25 }
 0x1ef   : > { %v3209_v55 = vpop.f32.mrf.mxu1  ;;  %v3267_v15 = vpop.f32.mrf.mxu0 }
 0x1f0   : > { %v2057_v58 = vadd.f32 %v3208_v14, %v4554_v59 }
 0x1f1   : > { %v3210_v16 = vpop.f32.mrf.mxu1  ;;  %v3268_v18 = vpop.f32.mrf.mxu0 }
 0x1f2   : > { %v4602_v22 = vadd.f32 %v3266_v53, %v2057_v58  ;;  %v3211_v23 = vadd.f32 %v3210_v16, %v3209_v55  ;;  %v3269_v26 = vadd.f32 %v3268_v18, %v3267_v15 }
 0x1f3   : > { %v3212_v27 = vpop.f32.mrf.mxu1  ;;  %v3270_v28 = vpop.f32.mrf.mxu0 }
 0x1f4   : > { %v2062_v4 = vadd.f32 %v3211_v23, %v4558_v29 }
 0x1f5   : > { %v3213_v30 = vpop.f32.mrf.mxu1  ;;  %v3271_v31 = vpop.f32.mrf.mxu0 }
 0x1f6   : > { %v4605_v36 = vadd.f32 %v3269_v26, %v2062_v4  ;;  %v3214_v34 = vadd.f32 %v3213_v30, %v3212_v27  ;;  %v3272_v35 = vadd.f32 %v3271_v31, %v3270_v28 }
 0x1f7   : > { %v3215_v40 = vpop.f32.mrf.mxu1  ;;  %v3273_v50 = vpop.f32.mrf.mxu0 }
 0x1f8   : > { %v2065_v59 = vadd.f32 %v3214_v34, %v4563_v42 }
 0x1f9   : > { %v3216_v41 = vpop.f32.mrf.mxu1  ;;  %v3274_v6 = vpop.f32.mrf.mxu0 }
 0x1fa   : > { %v4608_v44 = vadd.f32 %v3272_v35, %v2065_v59  ;;  %v3217_v8 = vadd.f32 %v3216_v41, %v3215_v40  ;;  %v3275_v12 = vadd.f32 %v3274_v6, %v3273_v50 }
 0x1fb   : > { %v3218_v47 = vpop.f32.mrf.mxu1  ;;  %v3276_v5 = vpop.f32.mrf.mxu0 }
 0x1fc   : > { %4852 = vst [vmem:[#allocation20_spill] sm:$0xff] %v4608_v44  ;;  %v2070_v29 = vadd.f32 %v3217_v8, %v4567_v48 }
 0x1fd   : > { %v3219_v37 = vpop.f32.mrf.mxu1  ;;  %v3277_v39 = vpop.f32.mrf.mxu0 }
 0x1fe   : > { %v4611_v49 = vadd.f32 %v3275_v12, %v2070_v29  ;;  %v3220_v51 = vadd.f32 %v3219_v37, %v3218_v47  ;;  %v3278_v52 = vadd.f32 %v3277_v39, %v3276_v5 }
 0x1ff   : > { %v3221_v56 = vpop.f32.mrf.mxu1  ;;  %v3279_v17 = vpop.f32.mrf.mxu0 }
 0x200   : > { %4853 = vst [vmem:[#allocation21_spill] sm:$0xff] %v4611_v49  ;;  %v2073_v42 = vadd.f32 %v3220_v51, %v4572_v0 }
 0x201   : > { %v3222_v54 = vpop.f32.mrf.mxu1  ;;  %v3280_v57 = vpop.f32.mrf.mxu0 }
 0x202   : > { %v4614_v62 = vadd.f32 %v3278_v52, %v2073_v42  ;;  %v3223_v63 = vadd.f32 %v3222_v54, %v3221_v56  ;;  %v3281_v1 = vadd.f32 %v3280_v57, %v3279_v17 }
 0x203   : > { %v3224_v61 = vpop.f32.mrf.mxu1  ;;  %v3282_v33 = vpop.f32.mrf.mxu0 }
 0x204   : > { %4854 = vst [vmem:[#allocation22_spill] sm:$0xff] %v4614_v62  ;;  %v2078_v48 = vadd.f32 %v3223_v63, %v4578_v9 }
 0x205   : > { %v3225_v2 = vpop.f32.mrf.mxu1  ;;  %v3283_v3 = vpop.f32.mrf.mxu0 }
 0x206   : > { %v4617_v21 = vadd.f32 %v3281_v1, %v2078_v48 }
 0x207   : > { %v3301_v24 = vpop.f32.mrf.mxu1  ;;  %v3359_v7 = vpop.f32.mrf.mxu0 }
 0x208   : > { %4855 = vst [vmem:[#allocation23_spill] sm:$0xff] %v4617_v21 }
 0x209   : > { %v3302_v25 = vpop.f32.mrf.mxu1  ;;  %v3360_v46 = vpop.f32.mrf.mxu0 }
 0x20a   : > { %v3303_v49 = vadd.f32 %v3302_v25, %v3301_v24 }
 0x20b   : > { %v3304_v10 = vpop.f32.mrf.mxu1  ;;  %v3362_v0 = vpop.f32.mrf.mxu0 }
 0x20d   : > { %v3305_v11 = vpop.f32.mrf.mxu1  ;;  %v3363_v14 = vpop.f32.mrf.mxu0 }
 0x20f   : > { %v3307_v53 = vpop.f32.mrf.mxu1  ;;  %v4619_v55 = vpop.f32.mrf.mxu0 }
 0x211   : > { %v3308_v15 = vpop.f32.mrf.mxu1  ;;  %v4621_v58 = vpop.f32.mrf.mxu0 }
 0x213   : > { %v3310_v16 = vpop.f32.mrf.mxu1  ;;  %v4623_v9 = vpop.f32.mrf.mxu0 }
 0x215   : > { %v3311_v18 = vpop.f32.mrf.mxu1  ;;  %v3369_v23 = vpop.f32.mrf.mxu0 }
 0x217   : > { %v4625_v26 = vpop.f32.mrf.mxu1  ;;  %v4627_v27 = vpop.f32.mrf.mxu0 }
 0x219   : > { %v4629_v28 = vpop.f32.mrf.mxu1  ;;  %v4631_v4 = vpop.f32.mrf.mxu0 }
 0x21b   : > { %v4633_v30 = vpop.f32.mrf.mxu1  ;;  %v4635_v31 = vpop.f32.mrf.mxu0 }
 0x21d   : > { %v4637_v34 = vpop.f32.mrf.mxu1  ;;  %v4639_v35 = vpop.f32.mrf.mxu0 }
 0x21f   : > { %v4641_v40 = vpop.f32.mrf.mxu1  ;;  %v4643_v50 = vpop.f32.mrf.mxu0 }
 0x221   : > { %v4645_v59 = vpop.f32.mrf.mxu1  ;;  %v4647_v41 = vpop.f32.mrf.mxu0 }
 0x223   : > { %v4649_v6 = vpop.f32.mrf.mxu1  ;;  %v4651_v8 = vpop.f32.mrf.mxu0 }
 0x225   : > { %v4653_v12 = vpop.f32.mrf.mxu1  ;;  %v4655_v47 = vpop.f32.mrf.mxu0 }
 0x227   : > { %v4657_v5 = vpop.f32.mrf.mxu1  ;;  %v4659_v29 = vpop.f32.mrf.mxu0 }
 0x229   : > { %v4661_v37 = vpop.f32.mrf.mxu1  ;;  %v4663_v39 = vpop.f32.mrf.mxu0 }
 0x22a   : > { %4856 = vst [vmem:[#allocation24_spill] sm:$0xff] %v4663_v39 }
 0x22b   : > { %v4665_v51 = vpop.f32.mrf.mxu1  ;;  %v4667_v52 = vpop.f32.mrf.mxu0 }
 0x22c   : > { %4857 = vst [vmem:[#allocation25_spill] sm:$0xff] %v4667_v52 }
 0x22d   : > { %v4669_v56 = vpop.f32.mrf.mxu1  ;;  %v4671_v17 = vpop.f32.mrf.mxu0 }
 0x22e   : > { %4858 = vst [vmem:[#allocation26_spill] sm:$0xff] %v4671_v17 }
 0x22f   : > { %v4673_v42 = vpop.f32.mrf.mxu1  ;;  %v4675_v54 = vpop.f32.mrf.mxu0 }
 0x230   : > { %4859 = vst [vmem:[#allocation27_spill] sm:$0xff] %v4673_v42  ;;  %4860 = vst [vmem:[#allocation28_spill] sm:$0xff] %v4675_v54 }
 0x231   : > { %v4677_v57 = vpop.f32.mrf.mxu1  ;;  %v4679_v63 = vpop.f32.mrf.mxu0 }
 0x232   : > { %4861 = vst [vmem:[#allocation29_spill] sm:$0xff] %v4677_v57  ;;  %4862 = vst [vmem:[#allocation30_spill] sm:$0xff] %v4679_v63 }
 0x233   : > { %v4681_v1 = vpop.f32.mrf.mxu1  ;;  %v4683_v61 = vpop.f32.mrf.mxu0 }
 0x234   : > { %4863 = vst [vmem:[#allocation31_spill] sm:$0xff] %v4681_v1  ;;  %4864 = vst [vmem:[#allocation32_spill] sm:$0xff] %v4683_v61  ;;  %v3306_v1 = vadd.f32 %v3305_v11, %v3304_v10  ;;  %v2206_v61 = vadd.f32 %v3303_v49, %v4581_v19  ;;  %v3367_v19 = vadd.f32 %v4621_v58, %v4619_v55 }
 0x235   : > { %v4685_v33 = vpop.f32.mrf.mxu1  ;;  %v4687_v48 = vpop.f32.mrf.mxu0 }
 0x236   : > { %4865 = vst [vmem:[#allocation33_spill] sm:$0xff] %v4685_v33  ;;  %4866 = vst [vmem:[#allocation34_spill] sm:$0xff] %v4687_v48  ;;  %v3361_v33 = vadd.f32 %v3360_v46, %v3359_v7  ;;  %v2209_v48 = vadd.f32 %v3306_v1, %v4584_v32  ;;  %v3370_v7 = vadd.f32 %v3369_v23, %v4623_v9  ;;  %v4871_v9 = vmov 0.0  }
 0x237   : > { %v4689_v2 = vpop.f32.mrf.mxu1  ;;  %v4691_v3 = vpop.f32.mrf.mxu0  ;;  %v3373_v23 = vadd.f32 %v4631_v4, %v4627_v27  ;;  %v3324_v27 = vadd.f32 %v4653_v12, %v4649_v6 }
 0x238   : > { %4867 = vst [vmem:[#allocation35_spill] sm:$0xff] %v4689_v2  ;;  %4868 = vst [vmem:[#allocation36_spill] sm:$0xff] %v4691_v3  ;;  %v3364_v2 = vadd.f32 %v3363_v14, %v3362_v0  ;;  %v2294_v52 = vadd.f32 %v3361_v33, %v2206_v61 }
 0x239   : > { %v4693_v38 = vpop.f32.mrf.mxu1  ;;  %v4695_v21 = vpop.f32.mrf.mxu0 }
 0x23a   : > { %4869 = vst [vmem:[#allocation37_spill] sm:$0xff] %v4693_v38  ;;  %4870 = vst [vmem:[#allocation38_spill] sm:$0xff] %v4695_v21  ;;  %v3309_v38 = vadd.f32 %v3308_v15, %v3307_v53  ;;  %v2297_v21 = vadd.f32 %v3364_v2, %v2209_v48  ;;  %v3315_v15 = vadd.f32 %v4629_v28, %v4625_v26 }
 0x23b   : > { %v3340_v62 = vpop.f32.mrf.mxu1  ;;  %v3398_v54 = vpop.f32.mrf.mxu0  ;;  %v3376_v26 = vadd.f32 %v4639_v35, %v4635_v31  ;;  %v3379_v35 = vadd.f32 %v4647_v41, %v4643_v50  ;;  %v2233_v2 = vadd.f32 %v3324_v27, %v4602_v22  ;;  %v3330_v50 = vadd.f32 %v4669_v56, %v4665_v51 }
 0x23c   : > { %v3312_v62 = vadd.f32 %v3311_v18, %v3310_v16  ;;  %v2214_v10 = vadd.f32 %v3309_v38, %v4587_v45  ;;  %v3318_v45 = vadd.f32 %v4637_v34, %v4633_v30 }
 0x23d   : > { %v3341_v63 = vpop.f32.mrf.mxu1  ;;  %v3399_v57 = vpop.f32.mrf.mxu0 }
 0x23e   : > { %v2302_v53 = vadd.f32 %v3367_v19, %v2214_v10  ;;  %v3321_v63 = vadd.f32 %v4645_v59, %v4641_v40  ;;  %v3382_v40 = vadd.f32 %v4655_v47, %v4651_v8  ;;  %v4872_v47 = vld [vmem:[#allocation24_spill] sm:$0xff] }
 0x23f   : > { %v3417_v42 = vpop.f32.mrf.mxu1 }
 0x240   : > { %v2321_v10 = vadd.f32 %v3382_v40, %v2233_v2 }
 0x241   : > { %v3418_v44 = vpop.f32.mrf.mxu1  ;;  %v4887_v27 = vld [vmem:[#allocation37_spill] sm:$0xff] }
 0x242   : > { %v3419_v17 = vadd.f32 %v3418_v44, %v3417_v42  ;;  %v2217_v44 = vadd.f32 %v3312_v62, %v4590_v43  ;;  %v2222_v43 = vadd.f32 %v3315_v15, %v4593_v60  ;;  %v4876_v15 = vld [vmem:[#allocation27_spill] sm:$0xff] }
 0x243   : > { %v3420_v3 = vpop.f32.mrf.mxu1 }
 0x244   : > { %v2382_v54 = vadd.f32 %v3419_v17, %v2294_v52  ;;  %v2305_v38 = vadd.f32 %v3370_v7, %v2217_v44  ;;  %v2225_v52 = vadd.f32 %v3318_v45, %v4596_v20  ;;  %v2310_v57 = vadd.f32 %v3373_v23, %v2222_v43  ;;  %v4879_v45 = vld [vmem:[#allocation33_spill] sm:$0xff] }
 0x245   : > { %v3421_v39 = vpop.f32.mrf.mxu1  ;;  %v2230_v20 = vadd.f32 %v3321_v63, %v4599_v13  ;;  %v4885_v63 = vld [vmem:[#allocation34_spill] sm:$0xff] }
 0x246   : > { %v3422_v24 = vadd.f32 %v3421_v39, %v3420_v3  ;;  %v2435_v46 = vmax.f32 %v2382_v54, 0.0  ;;  %v2313_v61 = vadd.f32 %v3376_v26, %v2225_v52  ;;  %v4882_v52 = vld [vmem:[#allocation30_spill] sm:$0xff] }
 0x247   : > { %v3423_v25 = vpop.f32.mrf.mxu1  ;;  %v2318_v54 = vadd.f32 %v3379_v35, %v2230_v20 }
 0x248   : > { %v2385_v49 = vadd.f32 %v3422_v24, %v2297_v21  ;;  %v3327_v24 = vadd.f32 %v4661_v37, %v4657_v5  ;;  %v4873_v5 = vld [vmem:[#allocation25_spill] sm:$0xff]  ;;  %v4874_v37 = vld [vmem:[#allocation26_spill] sm:$0xff] }
 0x249   : > { %v3424_v32 = vpop.f32.mrf.mxu1 }
 0x24a   : > { %v2436_v0 = vmax.f32 %v2385_v49, 0.0  ;;  %v3425_v11 = vadd.f32 %v3424_v32, %v3423_v25  ;;  %v2238_v22 = vadd.f32 %v3327_v24, %v4605_v36  ;;  %v3385_v49 = vadd.f32 %v4872_v47, %v4659_v29  ;;  %v4878_v36 = vld [vmem:[#allocation31_spill] sm:$0xff] }
 0x24b   : > { %v3426_v14 = vpop.f32.mrf.mxu1  ;;  %v3388_v32 = vadd.f32 %v4874_v37, %v4873_v5 }
 0x24c   : > { %v2448_v16 = vpack.c.bf16 %v2436_v0, %v2435_v46  ;;  %v2390_v21 = vadd.f32 %v3425_v11, %v2302_v53  ;;  %v4875_v46 = vld [vmem:[#allocation20_spill] sm:$0xff]  ;;  %v2326_v53 = vadd.f32 %v3385_v49, %v2238_v22 }
 0x24d   : > { %v3427_v18 = vpop.f32.mrf.mxu1  ;;  %v2241_v0 = vadd.f32 %v3330_v50, %v4875_v46  ;;  %v4047_v46 = vmov 0  }
 0x24e   : > { %v3428_v55 = vadd.f32 %v3427_v18, %v3426_v14  ;;  %3499 = vmatmul.mubr.bf16.vlgmr.msra.gmra.mxu0 %v2448_v16  ;;  %v2437_v30 = vmax.f32 %v2390_v21, 0.0  ;;  %v4877_v16 = vld [vmem:[#allocation29_spill] sm:$0xff]  ;;  %v3336_v21 = vadd.f32 %v4879_v45, %v4878_v36  ;;  %3660 = vset.pattern.permute.xlu0 %v4047_v46  ;;  %v2634_v46 = vld [vmem:[#allocation12] sm:$0x1] }
 0x24f   : > { %v3429_v58 = vpop.f32.mrf.mxu1  ;;  %3502 = vmatprep.mubr.msk.bf16.mxu0 %vm4046_vm0, %v4871_v9  ;;  %v3333_v18 = vadd.f32 %v4877_v16, %v4876_v15 }
 0x250   : > { %v2393_v39 = vadd.f32 %v3428_v55, %v2305_v38  ;;  %v2329_v55 = vadd.f32 %v3388_v32, %v2241_v0  ;;  %v4761_v0 = vld [vmem:[#allocation11] ss:$0 sm:$0xff] }
 0x251   : > { %v3430_v28 = vpop.f32.mrf.mxu1 }
 0x252   : > { %v2438_v34 = vmax.f32 %v2393_v39, 0.0  ;;  %v3431_v17 = vadd.f32 %v3430_v28, %v3429_v58  ;;  %v4880_v39 = vld [vmem:[#allocation21_spill] sm:$0xff]  ;;  %v4881_v28 = vld [vmem:[#allocation28_spill] sm:$0xff] }
 0x253   : > { %v3432_v42 = vpop.f32.mrf.mxu1  ;;  %v2246_v26 = vadd.f32 %v3333_v18, %v4880_v39 }
 0x254   : > { %v2449_v1 = vpack.c.bf16 %v2438_v34, %v2437_v30  ;;  %v2398_v4 = vadd.f32 %v3431_v17, %v2310_v57  ;;  %v3391_v30 = vadd.f32 %v4882_v52, %v4881_v28  ;;  %v4883_v17 = vld [vmem:[#allocation22_spill] sm:$0xff]  ;;  %v4884_v57 = vld [vmem:[#allocation32_spill] sm:$0xff] }
 0x255   : > { %v3433_v60 = vpop.f32.mrf.mxu1 }
 0x256   : > { %v3434_v33 = vadd.f32 %v3433_v60, %v3432_v42  ;;  %3503 = vmatmul.mubr.bf16.gmra.mxu0 %v2449_v1  ;;  %v2439_v6 = vmax.f32 %v2398_v4, 0.0  ;;  %v2249_v42 = vadd.f32 %v3336_v21, %v4883_v17  ;;  %v3394_v1 = vadd.f32 %v4885_v63, %v4884_v57 }
 0x257   : > { %v3435_v31 = vpop.f32.mrf.mxu1  ;;  %3506 = vmatprep.mubr.msk.bf16.mxu0 %vm4046_vm0, %v4871_v9 }
 0x258   : > { %v2401_v48 = vadd.f32 %v3434_v33, %v2313_v61  ;;  %v4886_v61 = vld [vmem:[#allocation35_spill] sm:$0xff] }
 0x259   : > { %v3436_v59 = vpop.f32.mrf.mxu1  ;;  %v3339_v4 = vadd.f32 %v4887_v27, %v4886_v61 }
 0x25a   : > { %v2440_v12 = vmax.f32 %v2401_v48, 0.0  ;;  %v3437_v3 = vadd.f32 %v3436_v59, %v3435_v31  ;;  %v2334_v48 = vadd.f32 %v3391_v30, %v2246_v26  ;;  %v2337_v59 = vadd.f32 %v3394_v1, %v2249_v42 }
 0x25b   : > { %v3438_v62 = vpop.f32.mrf.mxu1 }
 0x25c   : > { %v2450_v25 = vpack.c.bf16 %v2440_v12, %v2439_v6  ;;  %v2406_v41 = vadd.f32 %v3437_v3, %v2318_v54  ;;  %v4888_v6 = vld [vmem:[#allocation23_spill] sm:$0xff]  ;;  %v4889_v3 = vld [vmem:[#allocation36_spill] sm:$0xff] }
 0x25d   : > { %v3439_v13 = vpop.f32.mrf.mxu1  ;;  %v2254_v12 = vadd.f32 %v3339_v4, %v4888_v6 }
 0x25e   : > { %v3440_v19 = vadd.f32 %v3439_v13, %v3438_v62  ;;  %3507 = vmatmul.mubr.bf16.gmra.mxu0 %v2450_v25  ;;  %v2441_v51 = vmax.f32 %v2406_v41, 0.0  ;;  %v4890_v62 = vld [vmem:[#allocation38_spill] sm:$0xff] }
 0x25f   : > { %v3441_v8 = vpop.f32.mrf.mxu1  ;;  %3510 = vmatprep.mubr.msk.bf16.mxu0 %vm4046_vm0, %v4871_v9  ;;  %v3397_v54 = vadd.f32 %v4890_v62, %v4889_v3 }
 0x260   : > { %v2409_v7 = vadd.f32 %v3440_v19, %v2321_v10 }
 0x261   : > { %v3442_v44 = vpop.f32.mrf.mxu1  ;;  %v2342_v41 = vadd.f32 %v3397_v54, %v2254_v12 }
 0x262   : > { %v2442_v56 = vmax.f32 %v2409_v7, 0.0  ;;  %v3443_v11 = vadd.f32 %v3442_v44, %v3441_v8  ;;  %v2635_v44 = vld [vmem:[#allocation2] sm:$0x1] }
 0x263   : > { %v3444_v14 = vpop.f32.mrf.mxu1  ;;  %2638 = vperm.xlu0 %3660, %v2635_v44  }
 0x264   : > { %v2451_v38 = vpack.c.bf16 %v2442_v56, %v2441_v51  ;;  %v2414_v58 = vadd.f32 %v3443_v11, %v2326_v53 }
 0x265   : > { %v3445_v29 = vpop.f32.mrf.mxu1 }
 0x266   : > { %v3446_v43 = vadd.f32 %v3445_v29, %v3444_v14  ;;  %3511 = vmatmul.mubr.bf16.gmra.mxu0 %v2451_v38  ;;  %v2443_v33 = vmax.f32 %v2414_v58, 0.0 }
 0x267   : > { %v3447_v23 = vpop.f32.mrf.mxu1  ;;  %3514 = vmatprep.mubr.msk.bf16.mxu0 %vm4046_vm0, %v4871_v9 }
 0x268   : > { %v2417_v34 = vadd.f32 %v3446_v43, %v2329_v55 }
 0x269   : > { %v3448_v60 = vpop.f32.mrf.mxu1 }
 0x26a   : > { %v2444_v31 = vmax.f32 %v2417_v34, 0.0  ;;  %v3449_v20 = vadd.f32 %v3448_v60, %v3447_v23 }
 0x26b   : > { %v3450_v35 = vpop.f32.mrf.mxu1 }
 0x26c   : > { %v2452_v40 = vpack.c.bf16 %v2444_v31, %v2443_v33  ;;  %v2422_v24 = vadd.f32 %v3449_v20, %v2334_v48 }
 0x26d   : > { %v3451_v2 = vpop.f32.mrf.mxu1 }
 0x26e   : > { %v3452_v25 = vadd.f32 %v3451_v2, %v3450_v35  ;;  %3515 = vmatmul.mubr.bf16.gmra.mxu0 %v2452_v40  ;;  %v2445_v19 = vmax.f32 %v2422_v24, 0.0 }
 0x26f   : > { %v3453_v13 = vpop.f32.mrf.mxu1  ;;  %3518 = vmatprep.mubr.msk.bf16.mxu0 %vm4046_vm0, %v4871_v9 }
 0x270   : > { %v2425_v10 = vadd.f32 %v3452_v25, %v2337_v59 }
 0x271   : > { %v3454_v50 = vpop.f32.mrf.mxu1 }
 0x272   : > { %v2446_v8 = vmax.f32 %v2425_v10, 0.0  ;;  %v3455_v22 = vadd.f32 %v3454_v50, %v3453_v13 }
 0x273   : > { %v3456_v47 = vpop.f32.mrf.mxu1 }
 0x274   : > { %v2453_v49 = vpack.c.bf16 %v2446_v8, %v2445_v19  ;;  %v2430_v7 = vadd.f32 %v3455_v22, %v2342_v41 }
 0x275   : > { %v3457_v5 = vpop.f32.mrf.mxu1 }
 0x276   : > { %3519 = vmatmul.mubr.bf16.gmra.mxu0 %v2453_v49  ;;  %v2447_v37 = vmax.f32 %v2430_v7, 0.0 }
 0x277   : > { %3522 = vmatprep.mubr.msk.bf16.mxu0 %vm4046_vm0, %v4871_v9 }
 0x278   : > { %v2454_v32 = vpack.c.bf16 %v2447_v37, %v2447_v37 }
 0x27e   : > { %3523 = vmatmul.mubr.bf16.gmra.mxu0 %v2454_v32 }
 0x30e   : > { %v2560_v51 = vpop.f32.mrf.mxu0 }
 0x30f   : > { %v2561_v11 = vadd.f32 %v4761_v0, %v2560_v51  ;;  %v2641_v51 = vlaneseq }
 0x310   : > { %v3500_v56 = vpop.f32.mrf.mxu0 }
 0x311   : > { %v2614_v16 = vmax.f32 %v2561_v11, 0.0  ;;  %v2642_v56 = vshrl.u32 %v2641_v51, 7 }
 0x312   : > { %v2563_v14 = vpop.f32.mrf.mxu0 }
 0x313   : > { %v2564_v53 = vadd.f32 %v4761_v0, %v2563_v14  ;;  %v2643_v11 = vsub.s32 0, %v2642_v56 }
 0x314   : > { %v3501_v15 = vpop.f32.mrf.mxu0 }
 0x315   : > { %v2615_v18 = vmax.f32 %v2564_v53, 0.0 }
 0x316   : > { %v2568_v38 = vpop.f32.mrf.mxu0 }
 0x317   : > { %v4765_v36 = vpack.c.bf16 %v2615_v18, %v2614_v16  ;;  %v2569_v21 = vadd.f32 %v4761_v0, %v2568_v38 }
 0x318   : > { %v3504_v45 = vpop.f32.mrf.mxu0 }
 0x319   : > { %v2616_v43 = vmax.f32 %v2569_v21, 0.0 }
 0x31a   : > { %v2571_v29 = vpop.f32.mrf.mxu0 }
 0x31b   : > { %v2572_v55 = vadd.f32 %v4761_v0, %v2571_v29 }
 0x31c   : > { %v3505_v58 = vpop.f32.mrf.mxu0 }
 0x31d   : > { %v2617_v23 = vmax.f32 %v2572_v55, 0.0 }
 0x31e   : > { %v2576_v39 = vpop.f32.mrf.mxu0 }
 0x31f   : > { %v2628_v26 = vpack.c.bf16 %v2617_v23, %v2616_v43  ;;  %v2577_v5 = vadd.f32 %v4761_v0, %v2576_v39 }
 0x320   : > { %v3508_v28 = vpop.f32.mrf.mxu0 }
 0x321   : > { %v2618_v32 = vmax.f32 %v2577_v5, 0.0 }
 0x322   : > { %v2579_v52 = vpop.f32.mrf.mxu0 }
 0x323   : > { %v2580_v49 = vadd.f32 %v4761_v0, %v2579_v52 }
 0x324   : > { %v3509_v30 = vpop.f32.mrf.mxu0 }
 0x325   : > { %v2619_v37 = vmax.f32 %v2580_v49, 0.0 }
 0x326   : > { %v2584_v34 = vpop.f32.mrf.mxu0 }
 0x327   : > { %v2585_v8 = vadd.f32 %v4761_v0, %v2584_v34  ;;  %v2629_v44 = vpack.c.bf16 %v2619_v37, %v2618_v32 }
 0x328   : > { %v3512_v17 = vpop.f32.mrf.mxu0 }
 0x329   : > { %v2620_v47 = vmax.f32 %v2585_v8, 0.0 }
 0x32a   : > { %v2587_v42 = vpop.f32.mrf.mxu0 }
 0x32b   : > { %v2588_v41 = vadd.f32 %v4761_v0, %v2587_v42 }
 0x32c   : > { %v3513_v57 = vpop.f32.mrf.mxu0 }
 0x32d   : > { %v2621_v22 = vmax.f32 %v2588_v41, 0.0 }
 0x32e   : > { %v2592_v63 = vpop.f32.mrf.mxu0 }
 0x32f   : > { %v2593_v13 = vadd.f32 %v4761_v0, %v2592_v63  ;;  %v2630_v7 = vpack.c.bf16 %v2621_v22, %v2620_v47 }
 0x330   : > { %v3516_v1 = vpop.f32.mrf.mxu0 }
 0x331   : > { %v2622_v50 = vmax.f32 %v2593_v13, 0.0 }
 0x332   : > { %v2595_v60 = vpop.f32.mrf.mxu0 }
 0x333   : > { %v2596_v24 = vadd.f32 %v4761_v0, %v2595_v60 }
 0x334   : > { %v3517_v61 = vpop.f32.mrf.mxu0 }
 0x335   : > { %v2623_v10 = vmax.f32 %v2596_v24, 0.0 }
 0x336   : > { %v2600_v27 = vpop.f32.mrf.mxu0 }
 0x337   : > { %v2601_v3 = vadd.f32 %v4761_v0, %v2600_v27  ;;  %v2631_v19 = vpack.c.bf16 %v2623_v10, %v2622_v50 }
 0x338   : > { %v3520_v4 = vpop.f32.mrf.mxu0 }
 0x339   : > { %v2624_v54 = vmax.f32 %v2601_v3, 0.0 }
 0x33a   : > { %v2603_v33 = vpop.f32.mrf.mxu0 }
 0x33b   : > { %v2604_v2 = vadd.f32 %v4761_v0, %v2603_v33 }
 0x33c   : > { %v3521_v31 = vpop.f32.mrf.mxu0 }
 0x33d   : > { %v2625_v62 = vmax.f32 %v2604_v2, 0.0 }
 0x33e   : > { %v2608_v20 = vpop.f32.mrf.mxu0 }
 0x33f   : > { %v2609_v35 = vadd.f32 %v4761_v0, %v2608_v20  ;;  %v2632_v25 = vpack.c.bf16 %v2625_v62, %v2624_v54  ;;  %v2639_v0 = vpop.permute.xlu0 %2638 }
 0x340   : > { %v3524_v48 = vpop.f32.mrf.mxu0  ;;  %v2644_v14 = vrot.slane %v2639_v0, %v2643_v11 }
 0x341   : > { %v2626_v40 = vmax.f32 %v2609_v35, 0.0 }
 0x342   : > { %v2611_v59 = vpop.f32.mrf.mxu0 }
 0x343   : > { %v2633_v6 = vpack.c.bf16 %v2626_v40, %v2626_v40 }
 0x344   : > { %v3525_v12 = vpop.f32.mrf.mxu0 }
 0x345   : > { %3527 = vmatpush3.bf16.xpose.msra.mxu1 %v2633_v6 }
 0x346   : > { %3528 = vmatprep.subr.bf16.mxu1 %v4871_v9 }
 0x34d   : > { %3529 = vmatpush3.bf16.xpose.msra.mxu1 %v2632_v25 }
 0x34e   : > { %3530 = vmatprep.subr.bf16.mxu1 %v4871_v9 }
 0x355   : > { %3531 = vmatpush3.bf16.xpose.msra.mxu1 %v2631_v19 }
 0x356   : > { %3532 = vmatprep.subr.bf16.mxu1 %v4871_v9 }
 0x35d   : > { %3533 = vmatpush3.bf16.xpose.msra.mxu1 %v2630_v7 }
 0x35e   : > { %3534 = vmatprep.subr.bf16.mxu1 %v4871_v9 }
 0x365   : > { %3535 = vmatpush3.bf16.xpose.msra.mxu1 %v2629_v44 }
 0x366   : > { %3536 = vmatprep.subr.bf16.mxu1 %v4871_v9 }
 0x36d   : > { %3537 = vmatpush3.bf16.xpose.msra.mxu1 %v2628_v26 }
 0x36e   : > { %3538 = vmatprep.subr.bf16.mxu1 %v4871_v9 }
 0x375   : > { %3539 = vmatpush3.bf16.xpose.msra.mxu1 %v4765_v36 }
 0x37c   : > { %3541 = vmatmul.mubr.bf16.vlgmr.msra.gmra.mxu1 %v2634_v46 }
 0x43c   : > { %v2679_v53 = vpop.f32.mrf.mxu1 }
 0x43d   : > { %v2680_v15 = vadd.f32 %v2679_v53, %v2644_v14 }
 0x43e   : > { %v3542_v16 = vpop.f32.mrf.mxu1 }
 0x43f   : > { %v2686_v18 = vand.u32 2147483647, %v2680_v15  ;;  %v2685_v28 = vmax.f32 %v2680_v15, 0.0 }
 0x440   : > { %v2682_v38 = vpop.f32.mrf.mxu1 }
 0x441   : > { %v2687_v45 = vsub.f32 0.0, %v2686_v18 }
 0x442   : > { %v3543_v21 = vpop.f32.mrf.mxu1 }
 0x443   : > { %v2688_v29 = vmul.f32 1.442695, %v2687_v45 }
 0x445   : > { %3797 = vpow2.f32 %v2688_v29 }
 0x452   : > { %v3798_v9 = vpop.eup %3797 }
 0x453   : > { %v2690_v36 = vadd.f32 1.0, %v3798_v9  ;;  %v2693_v55 = vmul.f32 -0.5, %v3798_v9  ;;  %v2696_v43 = vand.u32 2147483647, %v3798_v9 }
 0x455   : > { %3799 = vlog2.f32 %v2690_v36  ;;  %v2694_v58 = vadd.f32 1.0, %v2693_v55  ;;  %vm2697_vm1 = vcmp.lt.f32.partialorder %v2696_v43, 0.0004427343 }
 0x457   : > { %v2695_v26 = vmul.f32 %v3798_v9, %v2694_v58 }
 0x462   : > { %v3800_v23 = vpop.eup %3799 }
 0x463   : > { %v2692_v39 = vmul.f32 0.6931472, %v3800_v23 }
 0x465   : > { %v2698_v52 = vsel %vm2697_vm1, %v2695_v26, %v2692_v39 }
 0x466   : > { %v2699_v30 = vadd.f32 %v2698_v52, %v2685_v28 }
 0x468   : > { %2701 = vst.msk [vmem:[%s372_s16] sm:$0x1] %vm2700_vm2, %v2699_v30 }
 0x469   : > { %3970 = shalt.err (!%p3967_p5)
}
 0x46a   : > { %s3971_s21 = scalar_lea.hbm %s2713_s17, 16  ;;  %s3975_s24 = scalar_lea.hbm %s4828_s7, 32 }
 0x46b   : > { %p3972_p12 = scmp.ne.s32.totalorder %s2713_s17, %s3971_s21  ;;  %p3976_p10 = scmp.lt.s32.totalorder %s2713_s17, %s4828_s7 }
 0x46c   : > { %p3977_p1 = scmp.lt.s32.totalorder %s3975_s24, %s3971_s21 }
 0x46d   : > { %p3973_p13 = pnand %p3972_p12, %p4891_p7 }
 0x46e   : > { %p3978_p3 = por %p3977_p1, %p3976_p10 }
 0x46f   : > { %p3974_p8 = pneg %p3973_p13 }
 0x471   : > { %p3979_p0 = pnand %p3978_p3, %p3974_p8 }
 0x473   : > { %3982 = shalt.err (!%p3979_p0)
}
 0x474   : > { %3583 = dma.vmem_to_hbm [thread:$0]  (%p4891_p7), %s2716_s19, 16, %s2713_s17, %s2703_s23  }
 0x475 PF: > { %s2727_s13 = sand.u32 1, %s4021_s26   ;;  %p4892_p2 = scmp.ne.s32.totalorder %s4839_s15, 0 }
 0x476   : > { %s2728_s16 = scalar_lea.sflag [#allocation5], %s2727_s13 }
 0x477   : > { %p3602_p4 = pnand %p2836_p9, %p4892_p2 }
 0x479   : > { %p3603_p11 = pneg %p3602_p4 }
 0x47b   : > { %4016 = dma.done.wait (%p3603_p11), %s2728_s16, 16  }
 0x47c   : > { %4018 = vsyncadd (%p3603_p11), %s2728_s16, 4294967280  ;;  %p25_p6 = scmp.ge.s32.totalorder %s4117_s8, 4   ;;  %s4893_s26 = smov %s4025_s27 }
 0x47d   : > { %s4894_s27 = smov %s4029_s28  ;;  %s4895_s28 = smov %s4129_s11 }
 0x47e   : > { %s4896_s29 = smov %s4117_s8  ;;  %27 = sbr.rel (!%p25_p6) target bundleno = 11 (0xb), region = 113 }
 0x483   :  { %2732 = vsyncpa [#allocation4], 1 }
 0x484   :  { %2734 = vsyncpa [#allocation4 + $0x1], 1 }
 0x485   :  { %2735 = vsyncpa [#allocation7], 1 }
 0x486   :  { %2736 = vsyncpa [#allocation10], 1 }
 0x487   :  { %2737 = vsyncpa [#allocation13], 1 }
 0x488   :  { %2738 = vsyncpa [#allocation5], 1 }
 0x489   :  { %2740 = vsyncpa [#allocation5 + $0x1], 1 }

</bundles_post_ra>
